<compile_context>
chip_gen: v6e
topology: v6e:2x2x1
jax: 0.10.0
libtpu: 0.0.40
codegen_flags: <defaults>
</compile_context>

<pallas_src>
import functools

import numpy as np

import jax
import jax.numpy as jnp
from jax import lax
from jax.experimental import pallas as pl
from jax.experimental.pallas import tpu as pltpu


# --------------------- generation-dependent tile defaults -------------------

def _tpu_tile_defaults():
    """Tile / VMEM budget per TPU generation (v5e/v6e: 128 MiB, v7x: 64 MiB)."""
    try:
        vmem = int(pltpu.get_tpu_info().vmem_capacity_bytes)
    except Exception:
        vmem = 64 * 1024 * 1024                       # conservative fallback
    if vmem >= 128 * 1024 * 1024:                     # v5e / v6e
        return dict(vmem_limit_bytes=100 * 2**20,
                    block_m=512, block_n_qkv=1024,
                    block_q=512, block_kv=1024, block_i=512)
    # v7x (64 MiB VMEM): smaller row tiles, same lane-dense column tiles
    return dict(vmem_limit_bytes=48 * 2**20,
                block_m=256, block_n_qkv=512,
                block_q=512, block_kv=1024, block_i=512)


def _fit_block(pref, dim, align):
    """Largest multiple of `align` that is <= pref and divides dim."""
    assert dim % align == 0, f"dim {dim} must be a multiple of {align}"
    b = min(pref, dim)
    b = max(align, (b // align) * align)
    while dim % b:
        b -= align
    return b


# ----------------------------- kernel A: LN + QKV ---------------------------

def ln_qkv_kernel(x_ref, gamma_ref, beta_ref, w_ref, o_ref, ln_sc, *, eps):
    @pl.when(pl.program_id(1) == 0)
    def _ln():
        # LN(x) computed once per M tile, cached in bf16 scratch.
        x = x_ref[...].astype(jnp.float32)
        mu = jnp.mean(x, axis=-1, keepdims=True)
        var = jnp.mean(jnp.square(x - mu), axis=-1, keepdims=True)
        ln = (x - mu) * lax.rsqrt(var + eps) * gamma_ref[...].astype(jnp.float32) \
             + beta_ref[...].astype(jnp.float32)
        ln_sc[...] = ln.astype(jnp.bfloat16)

    o_ref[...] = jnp.dot(ln_sc[...], w_ref[...],
                         preferred_element_type=jnp.float32).astype(o_ref.dtype)


def ln_qkv_proj(x, gamma, beta, w_qkv, *, eps, block_m, block_n, vmem_limit):
    T, H = x.shape
    N = w_qkv.shape[1]
    assert T % block_m == 0 and N % block_n == 0
    grid = (T // block_m, N // block_n)               # n = "arbitrary" (LN cache)
    return pl.pallas_call(
        functools.partial(ln_qkv_kernel, eps=eps),
        out_shape=jax.ShapeDtypeStruct((T, N), jnp.bfloat16),
        grid=grid,
        in_specs=[
            pl.BlockSpec((block_m, H), lambda m, n: (m, 0)),   # x (full row for LN)
            pl.BlockSpec((1, H), lambda m, n: (0, 0)),         # gamma
            pl.BlockSpec((1, H), lambda m, n: (0, 0)),         # beta
            pl.BlockSpec((H, block_n), lambda m, n: (0, n)),   # W_qkv tile (bf16)
        ],
        out_specs=pl.BlockSpec((block_m, block_n), lambda m, n: (m, n)),
        scratch_shapes=[pltpu.VMEM((block_m, H), jnp.bfloat16)],  # cached LN(x)
        compiler_params=pltpu.CompilerParams(
            dimension_semantics=("parallel", "arbitrary"),
            vmem_limit_bytes=vmem_limit),
    )(x, gamma, beta, w_qkv)


# ------------------- kernel R: rotary pre-pass on q and k -------------------

def rope_kernel(qk_ref, c_ref, s_ref, o_ref, *, roll_shift):
    x = qk_ref[...].astype(jnp.float32)
    rot = x * c_ref[...] + pltpu.roll(x, roll_shift, axis=1) * s_ref[...]
    o_ref[...] = rot.astype(o_ref.dtype)


def rope_qk(qkv, cos_tab, sin_tab, *, num_heads, head_size, block_r, vmem_limit):
    """Apply rotary to the q and k sections of qkv; returns (T, 2H) bf16."""
    T = qkv.shape[0]
    nh, hs = num_heads, head_size
    assert qkv.shape[1] == 3 * nh * hs and T % block_r == 0
    grid = (T // block_r, 2 * nh)       # head axis inner => C/S DMA'd once/row-tile
    return pl.pallas_call(
        functools.partial(rope_kernel, roll_shift=hs // 2),
        out_shape=jax.ShapeDtypeStruct((T, 2 * nh * hs), jnp.bfloat16),
        grid=grid,
        in_specs=[
            pl.BlockSpec((block_r, hs), lambda t, h: (t, h)),  # q/k head block
            pl.BlockSpec((block_r, hs), lambda t, h: (t, 0)),  # C table
            pl.BlockSpec((block_r, hs), lambda t, h: (t, 0)),  # S table
        ],
        out_specs=pl.BlockSpec((block_r, hs), lambda t, h: (t, h)),
        compiler_params=pltpu.CompilerParams(
            dimension_semantics=("parallel", "arbitrary"),
            vmem_limit_bytes=vmem_limit),
    )(qkv, cos_tab, sin_tab)


# --------------------- kernel B: causal flash attention ---------------------

def flash_attn_kernel(q_ref, k_ref, v_ref, o_ref, m_sc, l_sc, acc_sc, *,
                      block_q, block_kv):
    i = pl.program_id(1)
    j = pl.program_id(2)
    # last kv tile intersecting the causal region of this q tile
    last_j = (i * block_q + block_q - 1) // block_kv

    @pl.when(j == 0)
    def _init():
        m_sc[...] = jnp.full(m_sc.shape, -1e30, m_sc.dtype)
        l_sc[...] = jnp.zeros(l_sc.shape, l_sc.dtype)
        acc_sc[...] = jnp.zeros(acc_sc.shape, acc_sc.dtype)

    def _step(apply_mask):
        # q is pre-roped and pre-scaled (scale folded into W_q); k pre-roped.
        s = lax.dot_general(q_ref[...], k_ref[...], (((1,), (1,)), ((), ())),
                            preferred_element_type=jnp.float32)
        if apply_mask:   # only on tiles that cross the diagonal
            row = i * block_q + lax.broadcasted_iota(jnp.int32, (block_q, block_kv), 0)
            col = j * block_kv + lax.broadcasted_iota(jnp.int32, (block_q, block_kv), 1)
            s = jnp.where(col <= row, s, -1e30)
        m_prev = m_sc[...]                       # (bq, 128), all lanes equal
        l_prev = l_sc[...]
        m_new = jnp.maximum(m_prev, jnp.max(s, axis=-1, keepdims=True))
        alpha = jnp.exp(m_prev - m_new)
        p = jnp.exp(s - m_new[:, :1])
        l_sc[...] = alpha * l_prev + jnp.sum(p, axis=-1, keepdims=True)
        acc_sc[...] = alpha[:, :1] * acc_sc[...] + jnp.dot(
            p.astype(jnp.bfloat16), v_ref[...], preferred_element_type=jnp.float32)
        m_sc[...] = m_new

    live = j <= last_j                                   # not fully masked
    on_diag = (j * block_kv + block_kv - 1) > (i * block_q)  # crosses diagonal

    @pl.when(jnp.logical_and(live, jnp.logical_not(on_diag)))
    def _full_tile():
        _step(False)

    @pl.when(jnp.logical_and(live, on_diag))
    def _diag_tile():
        _step(True)

    @pl.when(j == last_j)
    def _finalize():
        inv_l = pl.reciprocal(l_sc[...], approx=True)    # EUP slot, nearly free
        o_ref[...] = (acc_sc[...] * inv_l[:, :1]).astype(o_ref.dtype)


def flash_attention(qk_rot, qkv, *, num_heads, head_size, block_q, block_kv,
                    vmem_limit):
    T = qkv.shape[0]
    nh, hs = num_heads, head_size
    H = nh * hs
    assert qk_rot.shape == (T, 2 * H) and qkv.shape[1] == 3 * H
    assert T % block_q == 0 and T % block_kv == 0
    assert hs % 128 == 0, "head_size must be a multiple of the 128 lane width"
    nq, nkv = T // block_q, T // block_kv

    def kv_idx(i, j):
        # clamp fully-masked kv tiles to the last useful one => no new DMA
        return jnp.minimum(j, (i * block_q + block_q - 1) // block_kv)

    q_spec = pl.BlockSpec((block_q, hs), lambda h, i, j: (i, h))
    k_spec = pl.BlockSpec((block_kv, hs), lambda h, i, j: (kv_idx(i, j), nh + h))
    v_spec = pl.BlockSpec((block_kv, hs), lambda h, i, j: (kv_idx(i, j), 2 * nh + h))
    o_spec = pl.BlockSpec((block_q, hs), lambda h, i, j: (i, h))

    kernel = functools.partial(flash_attn_kernel, block_q=block_q, block_kv=block_kv)
    return pl.pallas_call(
        kernel,
        out_shape=jax.ShapeDtypeStruct((T, H), jnp.bfloat16),
        grid=(nh, nq, nkv),
        in_specs=[q_spec, k_spec, v_spec],
        out_specs=o_spec,
        scratch_shapes=[pltpu.VMEM((block_q, 128), jnp.float32),   # m (lane-wide)
                        pltpu.VMEM((block_q, 128), jnp.float32),   # l (lane-wide)
                        pltpu.VMEM((block_q, hs), jnp.float32)],   # acc
        compiler_params=pltpu.CompilerParams(
            dimension_semantics=("parallel", "parallel", "arbitrary"),
            vmem_limit_bytes=vmem_limit),
    )(qk_rot, qk_rot, qkv)


# --------------- kernel C: out-proj + MLP + residual (fused) ----------------

def out_mlp_kernel(x_ref, attn_ref, gamma_ref, beta_ref, wo_ref,
                   wi_ref, bi_ref, wf_ref, bf_ref, o_ref,
                   acc_sc, ln_sc, *, eps):
    ii = pl.program_id(1)

    @pl.when(ii == 0)
    def _init():
        x = x_ref[...].astype(jnp.float32)
        mu = jnp.mean(x, axis=-1, keepdims=True)
        var = jnp.mean(jnp.square(x - mu), axis=-1, keepdims=True)
        ln = (x - mu) * lax.rsqrt(var + eps) * gamma_ref[...].astype(jnp.float32) \
             + beta_ref[...].astype(jnp.float32)
        ln_sc[...] = ln.astype(jnp.bfloat16)
        acc_sc[...] = x                                   # residual

    # attention out-projection: one ko-row chunk of W_out per grid step
    acc_sc[...] += jnp.dot(attn_ref[...], wo_ref[...],
                           preferred_element_type=jnp.float32)
    # MLP: one block_i chunk of fc_in + gelu_new + fc_out, accumulated in f32
    h = jnp.dot(ln_sc[...], wi_ref[...], preferred_element_type=jnp.float32) \
        + bi_ref[...].astype(jnp.float32)
    g = 0.5 * h * (1.0 + jnp.tanh(0.7978845608028654 * (h + 0.044715 * h * h * h)))
    acc_sc[...] += jnp.dot(g.astype(jnp.bfloat16), wf_ref[...],
                           preferred_element_type=jnp.float32)

    @pl.when(ii == pl.num_programs(1) - 1)
    def _finalize():
        o_ref[...] = (acc_sc[...] + bf_ref[...].astype(jnp.float32)).astype(o_ref.dtype)


def out_proj_mlp_residual(x, attn, gamma, beta, w_out, w_fc_in, b_fc_in,
                          w_fc_out, b_fc_out, *, eps, block_m, block_i,
                          vmem_limit):
    T, H = x.shape
    I = w_fc_in.shape[1]
    assert T % block_m == 0 and I % block_i == 0
    n_i = I // block_i
    assert H % n_i == 0, "H must be divisible by I//block_i (W_out contraction tiling)"
    ko = H // n_i                       # W_out contraction chunk per grid step
    assert ko % 8 == 0
    grid = (T // block_m, n_i)          # I = reduction axis, last, "arbitrary"
    return pl.pallas_call(
        functools.partial(out_mlp_kernel, eps=eps),
        out_shape=jax.ShapeDtypeStruct((T, H), x.dtype),
        grid=grid,
        in_specs=[
            pl.BlockSpec((block_m, H), lambda m, i: (m, 0)),     # x (residual + LN)
            pl.BlockSpec((block_m, ko), lambda m, i: (m, i)),    # attn chunk
            pl.BlockSpec((1, H), lambda m, i: (0, 0)),           # ln gamma
            pl.BlockSpec((1, H), lambda m, i: (0, 0)),           # ln beta
            pl.BlockSpec((ko, H), lambda m, i: (i, 0)),          # W_out chunk
            pl.BlockSpec((H, block_i), lambda m, i: (0, i)),     # W_fc_in tile
            pl.BlockSpec((1, block_i), lambda m, i: (0, i)),     # b_fc_in tile
            pl.BlockSpec((block_i, H), lambda m, i: (i, 0)),     # W_fc_out tile
            pl.BlockSpec((1, H), lambda m, i: (0, 0)),           # b_fc_out
        ],
        out_specs=pl.BlockSpec((block_m, H), lambda m, i: (m, 0)),
        scratch_shapes=[pltpu.VMEM((block_m, H), jnp.float32),    # f32 accumulator
                        pltpu.VMEM((block_m, H), jnp.bfloat16)],  # cached LN(x)
        compiler_params=pltpu.CompilerParams(
            dimension_semantics=("parallel", "arbitrary"),
            vmem_limit_bytes=vmem_limit),
    )(x, attn, gamma, beta, w_out, w_fc_in, b_fc_in, w_fc_out, b_fc_out)


# ------------------------ weight prep & forward glue ------------------------

def prepare_params(raw, cfg):
    """One-time weight prep: bf16 cast, q/k column permutation, scale folding.

    The rotary halves are moved to head offsets [0:rd/2) and [hs/2:hs/2+rd/2)
    so the in-kernel rope is `x*C + roll(x, hs/2)*S` (lane-dense, no strided
    gathers).  The same permutation is applied to q and k => q.k^T unchanged.
    The attention scale hs^-0.5 is folded into the q columns.
    """
    H, nh, rd = cfg["hidden_size"], cfg["num_heads"], cfg["rotary_dim"]
    hs = H // nh
    hr = rd // 2
    assert rd % 2 == 0 and rd <= hs and hs % 2 == 0
    even = np.arange(0, rd, 2)
    odd = np.arange(1, rd, 2)
    rest = np.arange(rd, hs)
    n_a = hs // 2 - hr
    head_perm = np.concatenate([even, rest[:n_a], odd, rest[n_a:]])
    qk_perm = (np.arange(nh)[:, None] * hs + head_perm[None, :]).reshape(-1)

    w_qkv = np.asarray(raw["w_qkv"], dtype=np.float32)
    w_q = w_qkv[:, :H][:, qk_perm] * (hs ** -0.5)   # fold attention scale
    w_k = w_qkv[:, H:2 * H][:, qk_perm]
    w_v = w_qkv[:, 2 * H:]
    w_qkv_prep = np.concatenate([w_q, w_k, w_v], axis=1)

    bf16 = jnp.bfloat16
    return dict(
        ln_g=jnp.asarray(raw["ln_g"], jnp.float32),
        ln_b=jnp.asarray(raw["ln_b"], jnp.float32),
        w_qkv_prep=jnp.asarray(w_qkv_prep).astype(bf16),
        w_out=jnp.asarray(raw["w_out"]).astype(bf16),
        w_fc_in=jnp.asarray(raw["w_fc_in"]).astype(bf16),
        b_fc_in=jnp.asarray(raw["b_fc_in"], jnp.float32),
        w_fc_out=jnp.asarray(raw["w_fc_out"]).astype(bf16),
        b_fc_out=jnp.asarray(raw["b_fc_out"], jnp.float32),
    )


def rope_tables(position_ids, cfg):
    """Full-head-width (T, head_size) C/S tables for x*C + roll(x, hs/2)*S."""
    H, nh, rd = cfg["hidden_size"], cfg["num_heads"], cfg["rotary_dim"]
    hs = H // nh
    hr = rd // 2
    T = position_ids.shape[0]
    inv_freq = 1.0 / (cfg["rope_theta"] **
                      (jnp.arange(0, rd, 2, dtype=jnp.float32) / rd))
    ang = position_ids.astype(jnp.float32)[:, None] * inv_freq[None, :]   # (T, hr)
    cos, sin = jnp.cos(ang), jnp.sin(ang)
    ones_a = jnp.ones((T, hs // 2 - hr), jnp.float32)
    ones_b = jnp.ones((T, hs - hs // 2 - hr), jnp.float32)
    zeros_a = jnp.zeros_like(ones_a)
    zeros_b = jnp.zeros_like(ones_b)
    C = jnp.concatenate([cos, ones_a, cos, ones_b], axis=-1)
    S = jnp.concatenate([-sin, zeros_a, sin, zeros_b], axis=-1)
    return C, S


def gptj_block_forward(position_ids, hidden_states, params, cfg, tiles=None):
    H, nh = cfg["hidden_size"], cfg["num_heads"]
    hs = H // nh
    T = hidden_states.shape[0]
    I = params["w_fc_in"].shape[1]

    t = dict(_tpu_tile_defaults())
    if tiles:
        t.update(tiles)
    block_m = _fit_block(t["block_m"], T, 8)
    block_n = _fit_block(t["block_n_qkv"], 3 * H, 128)
    block_q = _fit_block(t["block_q"], T, 8)
    block_kv = _fit_block(t["block_kv"], T, 8)
    block_i = _fit_block(t["block_i"], I, 128)
    block_r = _fit_block(256, T, 8)
    vmem_limit = t["vmem_limit_bytes"]

    cos_tab, sin_tab = rope_tables(position_ids, cfg)

    qkv = ln_qkv_proj(hidden_states, params["ln_g"], params["ln_b"],
                      params["w_qkv_prep"], eps=cfg["ln_eps"],
                      block_m=block_m, block_n=block_n, vmem_limit=vmem_limit)
    qk_rot = rope_qk(qkv, cos_tab, sin_tab, num_heads=nh, head_size=hs,
                     block_r=block_r, vmem_limit=vmem_limit)
    attn = flash_attention(qk_rot, qkv, num_heads=nh, head_size=hs,
                           block_q=block_q, block_kv=block_kv,
                           vmem_limit=vmem_limit)
    return out_proj_mlp_residual(
        hidden_states, attn, params["ln_g"], params["ln_b"], params["w_out"],
        params["w_fc_in"], params["b_fc_in"], params["w_fc_out"],
        params["b_fc_out"], eps=cfg["ln_eps"],
        block_m=block_m, block_i=block_i, vmem_limit=vmem_limit)


# --------------------------- pure-JAX reference -----------------------------

def gptj_block_reference(position_ids, x, raw, cfg):
    """Original GPT-J semantics (interleaved rotary, un-permuted weights)."""
    H, nh, rd = cfg["hidden_size"], cfg["num_heads"], cfg["rotary_dim"]
    hs = H // nh
    T = x.shape[0]
    f32 = jnp.float32
    q_ = lambda a: a.astype(jnp.bfloat16).astype(f32)  # bf16 round-trip

    mu = jnp.mean(x, -1, keepdims=True)
    var = jnp.mean(jnp.square(x - mu), -1, keepdims=True)
    ln = (x - mu) * lax.rsqrt(var + cfg["ln_eps"]) * raw["ln_g"] + raw["ln_b"]

    qkv = q_(jnp.dot(q_(ln), q_(raw["w_qkv"])))
    q, k, v = jnp.split(qkv, 3, axis=-1)
    q = q.reshape(T, nh, hs)
    k = k.reshape(T, nh, hs)
    v = v.reshape(T, nh, hs)

    inv_freq = 1.0 / (cfg["rope_theta"] ** (jnp.arange(0, rd, 2, dtype=f32) / rd))
    th = position_ids.astype(f32)[:, None] * inv_freq[None, :]
    cos = jnp.cos(th)[:, None, :]
    sin = jnp.sin(th)[:, None, :]

    def rot(xh):  # GPT-J interleaved (non-neox) rotary
        xr, xp = xh[..., :rd], xh[..., rd:]
        x1, x2 = xr[..., 0::2], xr[..., 1::2]
        o = jnp.stack([x1 * cos - x2 * sin, x2 * cos + x1 * sin],
                      axis=-1).reshape(xr.shape)
        return jnp.concatenate([o, xp], axis=-1)

    qr, kr = q_(rot(q)), q_(rot(k))
    s = jnp.einsum("qhd,khd->hqk", qr, kr) * (hs ** -0.5)
    causal = jnp.arange(T)[None, :] <= jnp.arange(T)[:, None]
    s = jnp.where(causal[None], s, -1e30)
    p = jax.nn.softmax(s, axis=-1)
    o = jnp.einsum("hqk,khd->qhd", q_(p), v)
    attn = q_(o.reshape(T, H))
    attn_out = jnp.dot(attn, q_(raw["w_out"]))

    h = jnp.dot(q_(ln), q_(raw["w_fc_in"])) + raw["b_fc_in"]
    g = 0.5 * h * (1.0 + jnp.tanh(0.7978845608028654 * (h + 0.044715 * h ** 3)))
    mlp = jnp.dot(q_(g), q_(raw["w_fc_out"])) + raw["b_fc_out"]
    return attn_out + mlp + x


# ----------------------------------- main ------------------------------------

if __name__ == "__main__":
    # Small GPT-J-like config (real GPT-J: H=4096, heads=16, head_size=256).
    cfg = dict(
        hidden_size=512,      # n_embd
        num_heads=4,          # head_size = 128
        rotary_dim=64,
        rope_theta=10000.0,
        ln_eps=1e-5,
        inner_dim=2048,       # 4 * n_embd
    )
    T = 64
    H, I = cfg["hidden_size"], cfg["inner_dim"]

    key = jax.random.PRNGKey(0)
    keys = jax.random.split(key, 8)
    scale = 0.05
    raw = dict(
        ln_g=jnp.ones((1, H), jnp.float32),
        ln_b=jnp.zeros((1, H), jnp.float32),
        w_qkv=(scale * jax.random.normal(keys[0], (H, 3 * H))).astype(jnp.float32),
        w_out=(scale * jax.random.normal(keys[1], (H, H))).astype(jnp.float32),
        w_fc_in=(scale * jax.random.normal(keys[2], (H, I))).astype(jnp.float32),
        b_fc_in=(scale * jax.random.normal(keys[3], (1, I))).astype(jnp.float32),
        w_fc_out=(scale * jax.random.normal(keys[4], (I, H))).astype(jnp.float32),
        b_fc_out=(scale * jax.random.normal(keys[5], (1, H))).astype(jnp.float32),
    )
    params = prepare_params(raw, cfg)

    hidden_states = jax.random.normal(keys[6], (T, H), jnp.float32)
    position_ids = jnp.arange(T, dtype=jnp.int32)

    out = jax.block_until_ready(
        gptj_block_forward(position_ids, hidden_states, params, cfg))
    assert out.shape == (T, H) and out.dtype == jnp.float32
    assert bool(jnp.all(jnp.isfinite(out)))

    ref = gptj_block_reference(position_ids, hidden_states, raw, cfg)
    max_err = float(jnp.max(jnp.abs(out - ref)))
    assert bool(jnp.allclose(out, ref, rtol=2e-2, atol=2e-2)), \
        f"mismatch vs reference, max abs err = {max_err}"
    print("KERNEL_OK")
</pallas_src>

<mosaic_0001>
module attributes {stable_mosaic.version = 11 : i64} {
  func.func @ln_qkv_kernel(%arg0: i32, %arg1: i32, %arg2: memref<64x512xf32, #tpu.memory_space<vmem>>, %arg3: memref<1x512xf32, #tpu.memory_space<vmem>>, %arg4: memref<1x512xf32, #tpu.memory_space<vmem>>, %arg5: memref<512x512xbf16, #tpu.memory_space<vmem>>, %arg6: memref<64x512xbf16, #tpu.memory_space<vmem>>, %arg7: memref<64x512xbf16, #tpu.memory_space<vmem>>) attributes {dimension_semantics = [#tpu.dimension_semantics<parallel>, #tpu.dimension_semantics<arbitrary>], iteration_bounds = array<i64: 1, 3>, scalar_prefetch = 0 : i64, scratch_operands = 1 : i64, tpu.core_type = #tpu.core_type<tc>, window_params = [{transform_indices = @transform_0, window_bounds = array<i64: 64, 512>}, {pipeline_mode = #tpu.pipeline_mode<synchronous>, transform_indices = @transform_1, window_bounds = array<i64: 1, 512>}, {pipeline_mode = #tpu.pipeline_mode<synchronous>, transform_indices = @transform_2, window_bounds = array<i64: 1, 512>}, {transform_indices = @transform_3, window_bounds = array<i64: 512, 512>}, {transform_indices = @transform_4, window_bounds = array<i64: 64, 512>}]} {
    %c0_i32 = arith.constant 0 : i32
    %0 = arith.cmpi eq, %arg1, %c0_i32 : i32
    %1 = arith.extui %0 : i1 to i32
    %c0_i32_0 = arith.constant 0 : i32
    %2 = arith.cmpi ne, %1, %c0_i32_0 : i32
    scf.if %2 {
      %c0_6 = arith.constant 0 : index
      %c0_7 = arith.constant 0 : index
      %8 = vector.load %arg2[%c0_6, %c0_7] : memref<64x512xf32, #tpu.memory_space<vmem>>, vector<64x512xf32>
      %cst_8 = arith.constant dense<0.000000e+00> : vector<64xf32>
      %9 = vector.multi_reduction <add>, %8, %cst_8 [1] : vector<64x512xf32> to vector<64xf32>
      %10 = vector.shape_cast %9 : vector<64xf32> to vector<64x1xf32>
      %cst_9 = arith.constant 5.120000e+02 : f32
      %11 = vector.broadcast %cst_9 : f32 to vector<64x1xf32>
      %12 = arith.divf %10, %11 : vector<64x1xf32>
      %13 = vector.broadcast %12 : vector<64x1xf32> to vector<64x512xf32>
      %14 = arith.subf %8, %13 : vector<64x512xf32>
      %15 = arith.mulf %14, %14 : vector<64x512xf32>
      %cst_10 = arith.constant dense<0.000000e+00> : vector<64xf32>
      %16 = vector.multi_reduction <add>, %15, %cst_10 [1] : vector<64x512xf32> to vector<64xf32>
      %17 = vector.shape_cast %16 : vector<64xf32> to vector<64x1xf32>
      %cst_11 = arith.constant 5.120000e+02 : f32
      %18 = vector.broadcast %cst_11 : f32 to vector<64x1xf32>
      %19 = arith.divf %17, %18 : vector<64x1xf32>
      %20 = vector.broadcast %12 : vector<64x1xf32> to vector<64x512xf32>
      %21 = arith.subf %8, %20 : vector<64x512xf32>
      %cst_12 = arith.constant 9.99999974E-6 : f32
      %22 = vector.broadcast %cst_12 : f32 to vector<64x1xf32>
      %23 = arith.addf %19, %22 : vector<64x1xf32>
      %24 = math.rsqrt %23 : vector<64x1xf32>
      %25 = vector.broadcast %24 : vector<64x1xf32> to vector<64x512xf32>
      %26 = arith.mulf %21, %25 : vector<64x512xf32>
      %c0_13 = arith.constant 0 : index
      %c0_14 = arith.constant 0 : index
      %27 = vector.load %arg3[%c0_13, %c0_14] : memref<1x512xf32, #tpu.memory_space<vmem>>, vector<1x512xf32>
      %28 = vector.broadcast %27 : vector<1x512xf32> to vector<64x512xf32>
      %29 = arith.mulf %26, %28 : vector<64x512xf32>
      %c0_15 = arith.constant 0 : index
      %c0_16 = arith.constant 0 : index
      %30 = vector.load %arg4[%c0_15, %c0_16] : memref<1x512xf32, #tpu.memory_space<vmem>>, vector<1x512xf32>
      %31 = vector.broadcast %30 : vector<1x512xf32> to vector<64x512xf32>
      %32 = arith.addf %29, %31 : vector<64x512xf32>
      %33 = arith.truncf %32 : vector<64x512xf32> to vector<64x512xbf16>
      %c0_17 = arith.constant 0 : index
      %c0_18 = arith.constant 0 : index
      %34 = vector.load %arg7[%c0_17, %c0_18] : memref<64x512xbf16, #tpu.memory_space<vmem>>, vector<64x512xbf16>
      tpu.vector_store %arg7[%c0_17, %c0_18], %33 {strides = array<i32>} : memref<64x512xbf16, #tpu.memory_space<vmem>>, vector<64x512xbf16>,
    } else {
    }
    %c0 = arith.constant 0 : index
    %c0_1 = arith.constant 0 : index
    %3 = vector.load %arg7[%c0, %c0_1] : memref<64x512xbf16, #tpu.memory_space<vmem>>, vector<64x512xbf16>
    %c0_2 = arith.constant 0 : index
    %c0_3 = arith.constant 0 : index
    %4 = vector.load %arg5[%c0_2, %c0_3] : memref<512x512xbf16, #tpu.memory_space<vmem>>, vector<512x512xbf16>
    %cst = arith.constant dense<0.000000e+00> : vector<64x512xf32>
    %5 = tpu.matmul %3, %4, %cst {dimension_numbers = #tpu.dot_dimension_numbers<[1], [0], [0], [1], [0, 0, 1, 1], [], []>} : vector<64x512xbf16>, vector<512x512xbf16>, vector<64x512xf32> -> vector<64x512xf32>
    %6 = arith.truncf %5 : vector<64x512xf32> to vector<64x512xbf16>
    %c0_4 = arith.constant 0 : index
    %c0_5 = arith.constant 0 : index
    %7 = vector.load %arg6[%c0_4, %c0_5] : memref<64x512xbf16, #tpu.memory_space<vmem>>, vector<64x512xbf16>
    tpu.vector_store %arg6[%c0_4, %c0_5], %6 {strides = array<i32>} : memref<64x512xbf16, #tpu.memory_space<vmem>>, vector<64x512xbf16>,
    return
  }
  func.func @transform_0(%arg0: i32, %arg1: i32) -> (i32, i32) {
    %c0_i32 = arith.constant 0 : i32
    %c0_i32_0 = arith.constant 0 : i32
    return %arg0, %c0_i32 : i32, i32
  }
  func.func @transform_1(%arg0: i32, %arg1: i32) -> (i32, i32) {
    %c0_i32 = arith.constant 0 : i32
    %c0_i32_0 = arith.constant 0 : i32
    %c0_i32_1 = arith.constant 0 : i32
    return %c0_i32, %c0_i32_0 : i32, i32
  }
  func.func @transform_2(%arg0: i32, %arg1: i32) -> (i32, i32) {
    %c0_i32 = arith.constant 0 : i32
    %c0_i32_0 = arith.constant 0 : i32
    %c0_i32_1 = arith.constant 0 : i32
    return %c0_i32, %c0_i32_0 : i32, i32
  }
  func.func @transform_3(%arg0: i32, %arg1: i32) -> (i32, i32) {
    %c0_i32 = arith.constant 0 : i32
    %c0_i32_0 = arith.constant 0 : i32
    return %c0_i32, %arg1 : i32, i32
  }
  func.func @transform_4(%arg0: i32, %arg1: i32) -> (i32, i32) {
    %c0_i32 = arith.constant 0 : i32
    return %arg0, %arg1 : i32, i32
  }
}

</mosaic_0001>

<bundles_post_ra>
// kernel: tpu_custom_call.1
= control target key start
LH: loop header
LB: loop body
LE: loop exit
PB: predicated region body
PF: predicated region fallthrough
CT: control target
= control target key end

     0   :  { %s3728_s0 = inlined_call_operand.hbm [shape: f32[64,512], index: 0, kind: input, shape index: {}]   ;;  %s3729_s1 = inlined_call_operand.hbm [shape: f32[1,512], index: 1, kind: input, shape index: {}]   ;;  %s3730_s2 = inlined_call_operand.hbm [shape: f32[1,512], index: 2, kind: input, shape index: {}]   ;;  %s3731_s3 = inlined_call_operand.hbm [shape: bf16[512,1536], index: 3, kind: input, shape index: {}]   ;;  %s3732_s4 = inlined_call_operand.hbm [shape: bf16[64,1536], index: 4, kind: output, shape index: {}]  }
   0x1   :  { %3738 = sst [smem:[#allocation16_spill]] %s3728_s0 }
   0x2   :  { %3739 = sst [smem:[#allocation17_spill]] %s3729_s1 }
   0x3   :  { %3740 = sst [smem:[#allocation18_spill]] %s3730_s2 }
   0x4   :  { %9 = vsyncpa [#allocation4], 0 }
   0x5   :  { %10 = vsyncpa [#allocation7], 0 }
   0x6   :  { %11 = vsyncpa [#allocation10], 0 }
   0x7   :  { %13 = vsyncpa [#allocation10 + $0x1], 0 }
   0x8   :  { %14 = vsyncpa [#allocation5], 0 }
   0x9   :  { %16 = vsyncpa [#allocation5 + $0x1], 0  ;;  %s2946_s15 = smov 0   ;;  %s2948_s16 = smov 0  }
   0xa   :  { %s2950_s17 = smov 0   ;;  %s2952_s18 = smov 0  }
   0xb   :  { %s2954_s19 = smov 0   ;;  %s2956_s20 = smov 0  }
   0xc LB: > { %s2150_s21 = sadd.s32 4294967295, %s2906_s20   ;;  %s2151_s22 = sadd.s32 4294967294, %s2906_s20   ;;  %s2906_s20 = sphi %s2956_s20, %s22_s20   ;;  %s2902_s19 = sphi %s2954_s19, %s3761_s19   ;;  %s2898_s18 = sphi %s2952_s18, %s3760_s18   ;;  %s2894_s17 = sphi %s2950_s17, %s3759_s17   ;;  %s2890_s16 = sphi %s2948_s16, %s3758_s16   ;;  %s2886_s15 = sphi %s2946_s15, %s3757_s15  }
   0xd   : > { %p116_p0 = scmp.ne.s32.totalorder %s2894_s17, %s2890_s16  ;;  %p117_p1 = scmp.eq.s32.totalorder %s2906_s20, 0 }
   0xe   : > { %p122_p2 = scmp.ne.s32.totalorder %s2890_s16, %s2886_s15  ;;  %p2983_p3 = scmp.eq.s32.totalorder %s2150_s21, 0 }
   0xf   : > { %p2987_p4 = por %p117_p1, %p116_p0  ;;  %p148_p5 = scmp.eq.s32.totalorder %s2150_s21, 2 }
  0x10   : > { %s3741_s23 = scalar_select %p2983_p3, 1, 0 }
  0x11   : > { %p2993_p6 = por %p2983_p3, %p122_p2  ;;  %p154_p7 = scmp.eq.s32.totalorder %s2151_s22, 2 }
  0x12   : > { %p2997_p8 = por %p148_p5, %p116_p0  ;;  %p2152_p9 = scmp.ge.s32.totalorder %s2906_s20, 1 }
  0x13   : > { %s3743_s25 = scalar_select %p2993_p6, 1, 0 }
  0x14   : > { %s3744_s26 = scalar_select %p2997_p8, 1, 0 }
  0x15   : > { %p3002_p10 = por %p154_p7, %p122_p2  ;;  %p161_p11 = scmp.lt.s32.totalorder %s2906_s20, 4 }
  0x16   : > { %s2908_s29 = smov [#allocation6]   ;;  %p2419_p0 = scmp.lt.s32.totalorder %s2906_s20, 3 }
  0x17   : > { %s3745_s27 = scalar_select %p3002_p10, 1, 0 }
  0x18   : > { %p3007_p12 = pnand %p2152_p9, %p161_p11  ;;  %s191_s30 = sshll.u32 %s2908_s29, 4  ;;  %s192_s30 = int_to_ptr.vmem [resolvable:$true] %s191_s30 }
  0x19   : > { %p3022_p2 = pnand %p2419_p0, %p2987_p4  ;;  %s2909_s7 = smov [#allocation3]  }
  0x1a   : > { %s3746_s28 = scalar_select %p3007_p12, 1, 0 }
  0x1b   : > { %p2398_p13 = pneg %p3007_p12  ;;  %s177_s8 = sshll.u32 %s2909_s7, 4  ;;  %s178_s8 = int_to_ptr.vmem [resolvable:$true] %s177_s8 }
  0x1c   : > { %s2723_s9 = scalar_lea.vmem %s192_s30, 64 }
  0x1d   : > { %p3016_p1 = pnand %p2398_p13, %p2983_p3  ;;  %p2724_p7 = scmp.ne.s32.totalorder %s192_s30, %s2723_s9 }
  0x1e   : > { %p2731_p13 = scmp.lt.s32.totalorder %s192_s30, %s192_s30  ;;  %p2732_p10 = scmp.lt.s32.totalorder %s2723_s9, %s2723_s9 }
  0x1f   : > { %p2714_p5 = pneg %p3016_p1 }
  0x20   : > { %p2733_p8 = por %p2732_p10, %p2731_p13 }
  0x21   : > { %p2726_p9 = pnand %p2724_p7, %p2714_p5 }
  0x23   : > { %p2727_p11 = pneg %p2726_p9 }
  0x25   : > { %p2734_p6 = pnand %p2733_p8, %p2727_p11 }
  0x27   : > { %2737 = shalt.err (!%p2734_p6)
}
  0x28   : > { %s3749_s1 = sld [smem:[#allocation17_spill]]  ;;  %s2749_s12 = scalar_lea.vmem %s178_s8, 4096 }
  0x29   : > { %p2750_p4 = scmp.ne.s32.totalorder %s178_s8, %s2749_s12  ;;  %p2757_p9 = scmp.lt.s32.totalorder %s178_s8, %s178_s8 }
  0x2a   : > { %p2758_p3 = scmp.lt.s32.totalorder %s2749_s12, %s2749_s12 }
  0x2b   : > { %p2752_p0 = pnand %p2750_p4, %p2714_p5 }
  0x2c   : > { %p2759_p12 = por %p2758_p3, %p2757_p9 }
  0x2d   : > { %p2753_p7 = pneg %p2752_p0 }
  0x2e   : > { %2404 = dma.hbm_to_vmem [thread:$0]  (!%p3016_p1), %s3749_s1, 64, %s192_s30, [#allocation7]  }
  0x2f   : > { %p2760_p10 = pnand %p2759_p12, %p2753_p7 }
  0x31   : > { %2763 = shalt.err (!%p2760_p10)
}
  0x32   : > { %s2910_s13 = smov 512   ;;  %s2911_s14 = smov 32  }
  0x33   : > { %s3750_s0 = sld [smem:[#allocation16_spill]]  ;;  %s2912_s24 = smov [#allocation8]  }
  0x34   : > { %s202_s29 = sshll.u32 %s2912_s24, 4  ;;  %s203_s29 = int_to_ptr.vmem [resolvable:$true] %s202_s29 }
  0x35   : > { %s2775_s30 = scalar_lea.vmem %s203_s29, 64  ;;  %p2783_p12 = scmp.lt.s32.totalorder %s203_s29, %s203_s29 }
  0x36   : > { %p2776_p6 = scmp.ne.s32.totalorder %s203_s29, %s2775_s30  ;;  %p2784_p11 = scmp.lt.s32.totalorder %s2775_s30, %s2775_s30 }
  0x38   : > { %p2778_p8 = pnand %p2776_p6, %p2714_p5  ;;  %p2785_p13 = por %p2784_p11, %p2783_p12 }
  0x39   : > { %2401 = dma.hbm_to_vmem [thread:$0]  (!%p3016_p1), %s3750_s0, 4096, %s178_s8, [#allocation4], %s2910_s13, %s2910_s13, %s2911_s14  }
  0x3a   : > { %p2779_p3 = pneg %p2778_p8 }
  0x3c   : > { %p2786_p4 = pnand %p2785_p13, %p2779_p3 }
  0x3e   : > { %2789 = shalt.err (!%p2786_p4)
}
  0x3f   : > { %s3751_s2 = sld [smem:[#allocation18_spill]]  ;;  %s31_s8 = sadd.s32 1, %s2902_s19 }
  0x40   : > { %s109_s10 = sadd.s32 1, %s2894_s17  ;;  %p32_p5 = scmp.ge.s32.totalorder %s31_s8, 3 }
  0x41   : > { %s213_s11 = sand.u32 1, %s2894_s17   ;;  %s2348_s5 = sshll.u32 %s2902_s19, 8 }
  0x42   : > { %s2157_s12 = sshll.u32 %s213_s11, 10  ;;  %s3763_s8 = smov (%p32_p5, %s31_s8), 0 }
  0x43   : > { %s106_s13 = ssub.s32 %s2902_s19, %s3763_s8  ;;  %s223_s22 = scalar_lea.hbm %s3731_s3, %s2348_s5 }
  0x44   : > { %p107_p0 = scmp.eq.s32.totalorder %s106_s13, 0  ;;  %s217_s24 = scalar_lea.vmem [#allocation9], %s2157_s12 }
  0x45   : > { %2407 = dma.hbm_to_vmem [thread:$0]  (!%p3016_p1), %s3751_s2, 64, %s203_s29, [#allocation7]  }
  0x46   : > { %s224_s30 = sshll.u32 %s217_s24, 4  ;;  %s214_s7 = scalar_lea.sflag [#allocation10], %s213_s11  ;;  %s225_s30 = int_to_ptr.vmem [resolvable:$true] %s224_s30 }
  0x47   : > { %s3064_s29 = scalar_select %p107_p0, %s2894_s17, %s109_s10  }
  0x48   : > { %p2792_p1 = pneg %p3022_p2  ;;  %s2803_s9 = scalar_lea.vmem %s225_s30, 16384 }
  0x49   : > { %p2804_p7 = scmp.ne.s32.totalorder %s225_s30, %s2803_s9  ;;  %s2913_s0 = smov [#allocation9]  }
  0x4a   : > { %s2808_s1 = sshll.u32 %s2913_s0, 4  ;;  %s2809_s1 = int_to_ptr.vmem [resolvable:$false] %s2808_s1 }
  0x4b   : > { %p2806_p9 = pnand %p2804_p7, %p2792_p1  ;;  %s2810_s2 = scalar_lea.vmem %s2809_s1, 32768 }
  0x4c   : > { %p2811_p6 = scmp.lt.s32.totalorder %s225_s30, %s2809_s1  ;;  %p2812_p8 = scmp.lt.s32.totalorder %s2810_s2, %s2803_s9 }
  0x4d   : > { %p2807_p10 = pneg %p2806_p9 }
  0x4e   : > { %p2813_p3 = por %p2812_p8, %p2811_p6 }
  0x50   : > { %p2814_p12 = pnand %p2813_p3, %p2807_p10 }
  0x52   : > { %2817 = shalt.err (!%p2814_p12)
}
  0x53   : > { %s2914_s12 = smov 768   ;;  %s2915_s10 = smov 256  }
  0x54   : > { %s2916_s5 = smov 16   ;;  %p3752_p11 = scmp.ne.s32.totalorder %s3746_s28, 0 }
  0x55   : > { %2411 = dma.hbm_to_vmem [thread:$0]  (!%p3022_p2), %s223_s22, 16384, %s225_s30, %s214_s7, %s2914_s12, %s2915_s10, %s2916_s5  }
  0x56   : > { %236 = sbr.rel (%p3752_p11) target bundleno = 826 (0x33a), region = 36  ;;  %p3753_p13 = scmp.ne.s32.totalorder (!%p3752_p11), %s3741_s23, 0 }
  0x5b   : > { %2869 = dma.done.wait (%p3753_p13), [#allocation4], 4096  }
  0x5c   : > { %2871 = vsyncadd (%p3753_p13), [#allocation4], 4294963200 }
  0x5d   : > { %2873 = dma.done.wait (%p3753_p13), [#allocation7], 128  }
  0x5e   : > { %2875 = vsyncadd (%p3753_p13), [#allocation7], 4294967168  ;;  %s3081_s0 = sand.u32 1, %s2890_s16   ;;  %p3754_p2 = scmp.ne.s32.totalorder %s3743_s25, 0 }
  0x5f   : > { %s2164_s1 = sshll.u32 %s3081_s0, 10  ;;  %s251_s2 = scalar_lea.sflag [#allocation10], %s3081_s0 }
  0x60   : > { %s3085_s28 = scalar_lea.vmem [#allocation9], %s2164_s1 }
  0x61   : > { %2877 = dma.done.wait (%p3754_p2), %s251_s2, 16384  }
  0x62   : > { %2879 = vsyncadd (%p3754_p2), %s251_s2, 4294950912  ;;  %s2165_s6 = sshll.u32 %s3081_s0, 7  ;;  %p2166_p4 = scmp.ne.s32.totalorder %s2898_s18, 0 }
  0x63   : > { %s3092_s11 = scalar_lea.vmem [#allocation11], %s2165_s6 }
  0x64   : > { %286 = sbr.rel (%p2166_p4) target bundleno = 454 (0x1c6), region = 56 }
  0x69   : > { %v3095_v0 = vld [vmem:[#allocation3 + $0x40] sm:$0xff]  ;;  %v3097_v1 = vld [vmem:[#allocation3 + $0x48] sm:$0xff]  ;;  %v3099_v2 = vld [vmem:[#allocation3 + $0x50] sm:$0xff] }
  0x6a   : > { %v329_v3 = vadd.f32 %v3097_v1, %v3095_v0  ;;  %v3103_v4 = vld [vmem:[#allocation3] sm:$0xff]  ;;  %v3105_v5 = vld [vmem:[#allocation3 + $0x8] sm:$0xff]  ;;  %v3107_v6 = vld [vmem:[#allocation3 + $0x58] sm:$0xff] }
  0x6b   : > { %v3109_v7 = vld [vmem:[#allocation3 + $0x10] sm:$0xff]  ;;  %v319_v8 = vadd.f32 %v3105_v5, %v3103_v4  ;;  %v3113_v9 = vld [vmem:[#allocation3 + $0x60] sm:$0xff]  ;;  %v3116_v11 = vld [vmem:[#allocation3 + $0x18] sm:$0xff] }
  0x6c   : > { %v330_v10 = vadd.f32 %v329_v3, %v3099_v2  ;;  %v3118_v12 = vld [vmem:[#allocation3 + $0x68] sm:$0xff]  ;;  %v3120_v13 = vld [vmem:[#allocation3 + $0x70] sm:$0xff]  ;;  %v3125_v16 = vld [vmem:[#allocation3 + $0x20] sm:$0xff] }
  0x6d   : > { %v320_v14 = vadd.f32 %v319_v8, %v3109_v7  ;;  %v334_v15 = vadd.f32 %v3118_v12, %v3113_v9  ;;  %v3127_v17 = vld [vmem:[#allocation3 + $0x28] sm:$0xff]  ;;  %v3129_v18 = vld [vmem:[#allocation3 + $0x30] sm:$0xff]  ;;  %v3132_v20 = vld [vmem:[#allocation3 + $0x78] sm:$0xff] }
  0x6e   : > { %v331_v19 = vadd.f32 %v330_v10, %v3107_v6  ;;  %v324_v21 = vadd.f32 %v3127_v17, %v3125_v16  ;;  %v3136_v22 = vld [vmem:[#allocation3 + $0xa0] sm:$0xff]  ;;  %v3138_v23 = vld [vmem:[#allocation3 + $0xa8] sm:$0xff]  ;;  %v3142_v26 = vld [vmem:[#allocation3 + $0x38] sm:$0xff] }
  0x6f   : > { %v321_v24 = vadd.f32 %v320_v14, %v3116_v11  ;;  %v335_v25 = vadd.f32 %v334_v15, %v3120_v13  ;;  %v3144_v27 = vld [vmem:[#allocation3 + $0xb0] sm:$0xff]  ;;  %v344_v28 = vadd.f32 %v3138_v23, %v3136_v22  ;;  %v3148_v29 = vld [vmem:[#allocation3 + $0x80] sm:$0xff]  ;;  %v3151_v31 = vld [vmem:[#allocation3 + $0xb8] sm:$0xff] }
  0x70   : > { %332 = vadd.xlane.f32.xlu1 %v331_v19  ;;  %v325_v30 = vadd.f32 %v324_v21, %v3129_v18  ;;  %v3153_v32 = vld [vmem:[#allocation3 + $0x88] sm:$0xff]  ;;  %v3155_v33 = vld [vmem:[#allocation3 + $0x90] sm:$0xff]  ;;  %v3161_v37 = vld [vmem:[#allocation3 + $0xe0] sm:$0xff] }
  0x71   : > { %322 = vadd.xlane.f32.xlu0 %v321_v24  ;;  %v336_v34 = vadd.f32 %v335_v25, %v3132_v20  ;;  %v345_v35 = vadd.f32 %v344_v28, %v3144_v27  ;;  %v339_v36 = vadd.f32 %v3153_v32, %v3148_v29  ;;  %v3163_v38 = vld [vmem:[#allocation3 + $0xe8] sm:$0xff]  ;;  %v3165_v39 = vld [vmem:[#allocation3 + $0xf0] sm:$0xff]  ;;  %v3168_v41 = vld [vmem:[#allocation3 + $0x98] sm:$0xff] }
  0x72   : > { %v326_v40 = vadd.f32 %v325_v30, %v3142_v26  ;;  %v354_v42 = vadd.f32 %v3163_v38, %v3161_v37  ;;  %v3172_v43 = vld [vmem:[#allocation3 + $0xc0] sm:$0xff]  ;;  %v3174_v44 = vld [vmem:[#allocation3 + $0xc8] sm:$0xff]  ;;  %v3177_v46 = vld [vmem:[#allocation3 + $0xd0] sm:$0xff] }
  0x73   : > { %v340_v45 = vadd.f32 %v339_v36, %v3155_v33  ;;  %v349_v47 = vadd.f32 %v3174_v44, %v3172_v43  ;;  %v346_v48 = vadd.f32 %v345_v35, %v3151_v31  ;;  %v3184_v51 = vld [vmem:[#allocation3 + $0xf8] sm:$0xff] }
  0x74   : > { %337 = vadd.xlane.f32.xlu1 %v336_v34  ;;  %v355_v49 = vadd.f32 %v354_v42, %v3165_v39  ;;  %v3187_v53 = vld [vmem:[#allocation3 + $0xd8] sm:$0xff] }
  0x75   : > { %327 = vadd.xlane.f32.xlu0 %v326_v40  ;;  %v341_v50 = vadd.f32 %v340_v45, %v3168_v41  ;;  %v350_v52 = vadd.f32 %v349_v47, %v3177_v46 }
  0x76   : > { %v356_v54 = vadd.f32 %v355_v49, %v3184_v51 }
  0x77   : > { %v351_v55 = vadd.f32 %v350_v52, %v3187_v53 }
  0x78   : > { %347 = vadd.xlane.f32.xlu1 %v346_v48 }
  0x79   : > { %342 = vadd.xlane.f32.xlu0 %v341_v50 }
  0x7c   : > { %357 = vadd.xlane.f32.xlu1 %v356_v54 }
  0x7d   : > { %352 = vadd.xlane.f32.xlu0 %v351_v55 }
  0xf9   : > { %v333_v56 = vpop.xlane.xlu1 %332 }
  0xfa   : > { %v362_v57 = vmul.f32 0.001953125, %v333_v56  ;;  %v323_v58 = vpop.xlane.xlu0 %322 }
  0xfb   : > { %v360_v59 = vmul.f32 0.001953125, %v323_v58 }
  0xfc   : > { %v3192_v60 = vsub.f32 %v3095_v0, %v362_v57  ;;  %v3195_v61 = vsub.f32 %v3097_v1, %v362_v57  ;;  %v3198_v62 = vsub.f32 %v3099_v2, %v362_v57  ;;  %v3201_v63 = vsub.f32 %v3107_v6, %v362_v57 }
  0xfd   : > { %v3204_v3 = vsub.f32 %v3103_v4, %v360_v59  ;;  %v3207_v8 = vsub.f32 %v3105_v5, %v360_v59  ;;  %v338_v10 = vpop.xlane.xlu1 %337  ;;  %v3210_v14 = vsub.f32 %v3109_v7, %v360_v59  ;;  %v3213_v0 = vsub.f32 %v3116_v11, %v360_v59 }
  0xfe   : > { %v363_v1 = vmul.f32 0.001953125, %v338_v10  ;;  %v328_v15 = vpop.xlane.xlu0 %327  ;;  %v408_v2 = vmul.f32 %v3192_v60, %v3192_v60  ;;  %v409_v6 = vmul.f32 %v3195_v61, %v3195_v61  ;;  %v410_v4 = vmul.f32 %v3198_v62, %v3198_v62 }
  0xff   : > { %v361_v5 = vmul.f32 0.001953125, %v328_v15  ;;  %v400_v19 = vmul.f32 %v3204_v3, %v3204_v3  ;;  %v401_v7 = vmul.f32 %v3207_v8, %v3207_v8  ;;  %v402_v11 = vmul.f32 %v3210_v14, %v3210_v14 }
 0x100   : > { %v3228_v21 = vsub.f32 %v3113_v9, %v363_v1  ;;  %v3231_v24 = vsub.f32 %v3118_v12, %v363_v1  ;;  %v403_v25 = vmul.f32 %v3213_v0, %v3213_v0  ;;  %v411_v28 = vmul.f32 %v3201_v63, %v3201_v63 }
 0x101   : > { %v3238_v30 = vsub.f32 %v3125_v16, %v361_v5  ;;  %v3241_v34 = vsub.f32 %v3127_v17, %v361_v5  ;;  %v348_v35 = vpop.xlane.xlu1 %347  ;;  %v432_v36 = vadd.f32 %v401_v7, %v400_v19  ;;  %v442_v40 = vadd.f32 %v409_v6, %v408_v2 }
 0x102   : > { %v365_v9 = vmul.f32 0.001953125, %v348_v35  ;;  %v343_v42 = vpop.xlane.xlu0 %342  ;;  %v3244_v12 = vsub.f32 %v3129_v18, %v361_v5  ;;  %v3247_v45 = vsub.f32 %v3142_v26, %v361_v5  ;;  %v3250_v47 = vsub.f32 %v3120_v13, %v363_v1 }
 0x103   : > { %v364_v48 = vmul.f32 0.001953125, %v343_v42  ;;  %v433_v16 = vadd.f32 %v432_v36, %v402_v11  ;;  %v443_v49 = vadd.f32 %v442_v40, %v410_v4  ;;  %v404_v17 = vmul.f32 %v3238_v30, %v3238_v30 }
 0x104   : > { %v3255_v50 = vsub.f32 %v3136_v22, %v365_v9  ;;  %v3258_v52 = vsub.f32 %v3138_v23, %v365_v9  ;;  %v405_v18 = vmul.f32 %v3241_v34, %v3241_v34  ;;  %v406_v26 = vmul.f32 %v3244_v12, %v3244_v12 }
 0x105   : > { %v3265_v13 = vsub.f32 %v3148_v29, %v364_v48  ;;  %v3268_v54 = vsub.f32 %v3153_v32, %v364_v48  ;;  %v358_v55 = vpop.xlane.xlu1 %357  ;;  %v434_v56 = vadd.f32 %v433_v16, %v403_v25  ;;  %v444_v57 = vadd.f32 %v443_v49, %v411_v28 }
 0x106   : > { %v367_v22 = vmul.f32 0.001953125, %v358_v55  ;;  %v353_v58 = vpop.xlane.xlu0 %352  ;;  %v407_v23 = vmul.f32 %v3247_v45, %v3247_v45  ;;  %v437_v59 = vadd.f32 %v405_v18, %v404_v17  ;;  %v3273_v10 = vsub.f32 %v3132_v20, %v363_v1 }
 0x107   : > { %v366_v15 = vmul.f32 0.001953125, %v353_v58  ;;  %435 = vadd.xlane.f32.xlu0 %v434_v56  ;;  %v412_v29 = vmul.f32 %v3228_v21, %v3228_v21  ;;  %v413_v32 = vmul.f32 %v3231_v24, %v3231_v24  ;;  %v414_v2 = vmul.f32 %v3250_v47, %v3250_v47 }
 0x108   : > { %v3282_v6 = vsub.f32 %v3161_v37, %v367_v22  ;;  %v3285_v4 = vsub.f32 %v3163_v38, %v367_v22  ;;  %v438_v5 = vadd.f32 %v437_v59, %v406_v26  ;;  %v415_v20 = vmul.f32 %v3273_v10, %v3273_v10 }
 0x109   : > { %v3290_v1 = vsub.f32 %v3172_v43, %v366_v15  ;;  %v3293_v19 = vsub.f32 %v3174_v44, %v366_v15  ;;  %v447_v7 = vadd.f32 %v413_v32, %v412_v29  ;;  %v3296_v11 = vsub.f32 %v3155_v33, %v364_v48 }
 0x10a   : > { %v439_v25 = vadd.f32 %v438_v5, %v407_v23  ;;  %v3299_v37 = vsub.f32 %v3168_v41, %v364_v48  ;;  %v416_v38 = vmul.f32 %v3265_v13, %v3265_v13  ;;  %v417_v28 = vmul.f32 %v3268_v54, %v3268_v54 }
 0x10b   : > { %445 = vadd.xlane.f32.xlu0 %v444_v57  ;;  %v448_v43 = vadd.f32 %v447_v7, %v414_v2  ;;  %v418_v44 = vmul.f32 %v3296_v11, %v3296_v11  ;;  %v3308_v35 = vsub.f32 %v3144_v27, %v365_v9  ;;  %v3311_v33 = vsub.f32 %v3151_v31, %v365_v9 }
 0x10c   : > { %440 = vadd.xlane.f32.xlu1 %v439_v25  ;;  %v419_v41 = vmul.f32 %v3299_v37, %v3299_v37  ;;  %v452_v36 = vadd.f32 %v417_v28, %v416_v38  ;;  %v420_v40 = vmul.f32 %v3255_v50, %v3255_v50  ;;  %v421_v42 = vmul.f32 %v3258_v52, %v3258_v52 }
 0x10d   : > { %v449_v48 = vadd.f32 %v448_v43, %v415_v20  ;;  %v422_v16 = vmul.f32 %v3308_v35, %v3308_v35  ;;  %v423_v27 = vmul.f32 %v3311_v33, %v3311_v33  ;;  %v3324_v31 = vsub.f32 %v3177_v46, %v366_v15 }
 0x10e   : > { %v453_v9 = vadd.f32 %v452_v36, %v418_v44  ;;  %v457_v49 = vadd.f32 %v421_v42, %v420_v40  ;;  %v3327_v17 = vsub.f32 %v3187_v53, %v366_v15  ;;  %v424_v18 = vmul.f32 %v3290_v1, %v3290_v1 }
 0x10f   : > { %v425_v26 = vmul.f32 %v3293_v19, %v3293_v19  ;;  %v426_v55 = vmul.f32 %v3324_v31, %v3324_v31  ;;  %v3336_v56 = vsub.f32 %v3165_v39, %v367_v22  ;;  %v3339_v46 = vsub.f32 %v3184_v51, %v367_v22 }
 0x110   : > { %450 = vadd.xlane.f32.xlu1 %v449_v48  ;;  %v454_v57 = vadd.f32 %v453_v9, %v419_v41  ;;  %v458_v58 = vadd.f32 %v457_v49, %v422_v16  ;;  %v428_v53 = vmul.f32 %v3282_v6, %v3282_v6  ;;  %v427_v23 = vmul.f32 %v3327_v17, %v3327_v17 }
 0x111   : > { %v462_v59 = vadd.f32 %v425_v26, %v424_v18  ;;  %v429_v15 = vmul.f32 %v3285_v4, %v3285_v4  ;;  %v430_v39 = vmul.f32 %v3336_v56, %v3336_v56  ;;  %v431_v22 = vmul.f32 %v3339_v46, %v3339_v46 }
 0x112   : > { %455 = vadd.xlane.f32.xlu0 %v454_v57  ;;  %v459_v29 = vadd.f32 %v458_v58, %v423_v27  ;;  %v530_v28 = vlaneseq }
 0x113   : > { %v463_v51 = vadd.f32 %v462_v59, %v426_v55  ;;  %v467_v32 = vadd.f32 %v429_v15, %v428_v53  ;;  %v528_v55 = vld [vmem:[#allocation6] sm:$0xf] }
 0x114   : > { %460 = vadd.xlane.f32.xlu1 %v459_v29  ;;  %v531_v42 = vshrl.u32 %v530_v28, 7 }
 0x115   : > { %v464_v2 = vadd.f32 %v463_v51, %v427_v23  ;;  %v468_v5 = vadd.f32 %v467_v32, %v430_v39  ;;  %v582_v39 = vld [vmem:[#allocation8] sm:$0xf] }
 0x116   : > { %v532_v49 = vsub.s32 0, %v531_v42  ;;  %v536_v57 = vsub.s32 1, %v531_v42  ;;  %v540_v58 = vsub.s32 2, %v531_v42  ;;  %v544_v53 = vsub.s32 3, %v531_v42 }
 0x117   : > { %465 = vadd.xlane.f32.xlu0 %v464_v2  ;;  %v469_v20 = vadd.f32 %v468_v5, %v431_v22 }
 0x118   : > { %v3351_v29 = vrot.slane %v528_v55, %v532_v49  ;;  %v3353_v32 = vrot.slane %v528_v55, %v536_v57  ;;  %v3355_v2 = vrot.slane %v528_v55, %v540_v58  ;;  %v3357_v5 = vrot.slane %v528_v55, %v544_v53 }
 0x119   : > { %470 = vadd.xlane.f32.xlu1 %v469_v20  ;;  %v3363_v28 = vrot.slane %v582_v39, %v540_v58 }
 0x190   : > { %v436_v7 = vpop.xlane.xlu0 %435 }
 0x191   : > { %v472_v25 = vmul.f32 0.001953125, %v436_v7 }
 0x193   : > { %v480_v38 = vadd.f32 1e-05, %v472_v25  ;;  %v3359_v25 = vrot.slane %v582_v39, %v532_v49 }
 0x194   : > { %v446_v43 = vpop.xlane.xlu0 %445 }
 0x195   : > { %2483 = vrsqrt.f32 %v480_v38  ;;  %v441_v44 = vpop.xlane.xlu1 %440  ;;  %v474_v41 = vmul.f32 0.001953125, %v446_v43  ;;  %v3361_v38 = vrot.slane %v582_v39, %v536_v57  ;;  %v3365_v43 = vrot.slane %v582_v39, %v544_v53 }
 0x196   : > { %v473_v36 = vmul.f32 0.001953125, %v441_v44 }
 0x197   : > { %v482_v40 = vadd.f32 1e-05, %v474_v41 }
 0x198   : > { %v481_v48 = vadd.f32 1e-05, %v473_v36 }
 0x199   : > { %2485 = vrsqrt.f32 %v482_v40  ;;  %v451_v16 = vpop.xlane.xlu1 %450 }
 0x19a   : > { %2487 = vrsqrt.f32 %v481_v48  ;;  %v475_v27 = vmul.f32 0.001953125, %v451_v16 }
 0x19b   : > { %v456_v9 = vpop.xlane.xlu0 %455 }
 0x19c   : > { %v483_v18 = vadd.f32 1e-05, %v475_v27  ;;  %v476_v26 = vmul.f32 0.001953125, %v456_v9 }
 0x19d   : > { %v461_v23 = vpop.xlane.xlu1 %460 }
 0x19e   : > { %2489 = vrsqrt.f32 %v483_v18  ;;  %v484_v59 = vadd.f32 1e-05, %v476_v26  ;;  %v477_v15 = vmul.f32 0.001953125, %v461_v23 }
 0x1a0   : > { %2491 = vrsqrt.f32 %v484_v59  ;;  %v485_v51 = vadd.f32 1e-05, %v477_v15  ;;  %v466_v22 = vpop.xlane.xlu0 %465 }
 0x1a1   : > { %v478_v20 = vmul.f32 0.001953125, %v466_v22 }
 0x1a2   : > { %v2484_v7 = vpop.eup %2483  ;;  %v471_v44 = vpop.xlane.xlu1 %470  ;;  %2493 = vrsqrt.f32 %v485_v51 }
 0x1a3   : > { %v496_v41 = vmul.f32 %v2484_v7, %v3204_v3  ;;  %v497_v36 = vmul.f32 %v2484_v7, %v3207_v8  ;;  %v498_v40 = vmul.f32 %v2484_v7, %v3210_v14  ;;  %v499_v42 = vmul.f32 %v2484_v7, %v3213_v0 }
 0x1a4   : > { %v486_v48 = vadd.f32 1e-05, %v478_v20  ;;  %v479_v16 = vmul.f32 0.001953125, %v471_v44 }
 0x1a5   : > { %v550_v27 = vmul.f32 %v3351_v29, %v496_v41  ;;  %v551_v9 = vmul.f32 %v3353_v32, %v497_v36  ;;  %v552_v49 = vmul.f32 %v3355_v2, %v498_v40  ;;  %v553_v18 = vmul.f32 %v3357_v5, %v499_v42 }
 0x1a6   : > { %v2486_v26 = vpop.eup %2485  ;;  %2495 = vrsqrt.f32 %v486_v48  ;;  %v3375_v3 = vadd.f32 1e-05, %v479_v16 }
 0x1a7   : > { %v2488_v8 = vpop.eup %2487  ;;  %v604_v14 = vadd.f32 %v3359_v25, %v550_v27  ;;  %v605_v0 = vadd.f32 %v3361_v38, %v551_v9  ;;  %v606_v55 = vadd.f32 %v3363_v28, %v552_v49  ;;  %v607_v57 = vadd.f32 %v3365_v43, %v553_v18 }
 0x1a8   : > { %v500_v58 = vmul.f32 %v2488_v8, %v3238_v30  ;;  %v501_v53 = vmul.f32 %v2488_v8, %v3241_v34  ;;  %v502_v23 = vmul.f32 %v2488_v8, %v3244_v12  ;;  %v503_v59 = vmul.f32 %v2488_v8, %v3247_v45 }
 0x1a9   : > { %v2349_v15 = vpack.c.bf16 %v605_v0, %v604_v14  ;;  %v2350_v39 = vpack.c.bf16 %v607_v57, %v606_v55  ;;  %v504_v51 = vmul.f32 %v2486_v26, %v3192_v60  ;;  %v505_v22 = vmul.f32 %v2486_v26, %v3195_v61 }
 0x1aa   : > { %v554_v20 = vmul.f32 %v3351_v29, %v500_v58  ;;  %v555_v7 = vmul.f32 %v3353_v32, %v501_v53  ;;  %v556_v44 = vmul.f32 %v3355_v2, %v502_v23  ;;  %v557_v30 = vmul.f32 %v3357_v5, %v503_v59 }
 0x1ab   : > { %v2490_v41 = vpop.eup %2489  ;;  %732 = vst [vmem:[#allocation2 + $0x30] sm:$0xff] %v2349_v15  ;;  %733 = vst [vmem:[#allocation2] sm:$0xff] %v2350_v39  ;;  %v506_v34 = vmul.f32 %v2486_v26, %v3198_v62  ;;  %v507_v12 = vmul.f32 %v2486_v26, %v3201_v63  ;;  %v558_v45 = vmul.f32 %v3351_v29, %v504_v51  ;;  %2497 = vrsqrt.f32 %v3375_v3 }
 0x1ac   : > { %v559_v60 = vmul.f32 %v3353_v32, %v505_v22  ;;  %v608_v61 = vadd.f32 %v3359_v25, %v554_v20  ;;  %v609_v36 = vadd.f32 %v3361_v38, %v555_v7  ;;  %v610_v40 = vadd.f32 %v3363_v28, %v556_v44 }
 0x1ad   : > { %v611_v42 = vadd.f32 %v3365_v43, %v557_v30  ;;  %v2492_v48 = vpop.eup %2491  ;;  %v560_v16 = vmul.f32 %v3355_v2, %v506_v34  ;;  %v561_v27 = vmul.f32 %v3357_v5, %v507_v12  ;;  %v612_v62 = vadd.f32 %v3359_v25, %v558_v45 }
 0x1ae   : > { %v613_v63 = vadd.f32 %v3361_v38, %v559_v60  ;;  %v2351_v9 = vpack.c.bf16 %v609_v36, %v608_v61  ;;  %v508_v18 = vmul.f32 %v2490_v41, %v3228_v21  ;;  %v509_v26 = vmul.f32 %v2490_v41, %v3231_v24 }
 0x1af   : > { %v2352_v49 = vpack.c.bf16 %v611_v42, %v610_v40  ;;  %v614_v8 = vadd.f32 %v3363_v28, %v560_v16  ;;  %v615_v14 = vadd.f32 %v3365_v43, %v561_v27  ;;  %v510_v55 = vmul.f32 %v2490_v41, %v3250_v47  ;;  %v2494_v21 = vpop.eup %2493 }
 0x1b0   : > { %v2353_v0 = vpack.c.bf16 %v613_v63, %v612_v62  ;;  %734 = vst [vmem:[#allocation2 + $0x58] sm:$0xff] %v2351_v9  ;;  %v511_v57 = vmul.f32 %v2490_v41, %v3273_v10  ;;  %v562_v58 = vmul.f32 %v3351_v29, %v508_v18  ;;  %v563_v53 = vmul.f32 %v3353_v32, %v509_v26 }
 0x1b1   : > { %735 = vst [vmem:[#allocation2 + $0x18] sm:$0xff] %v2352_v49  ;;  %v512_v23 = vmul.f32 %v2492_v48, %v3265_v13  ;;  %v2354_v59 = vpack.c.bf16 %v615_v14, %v614_v8  ;;  %v564_v24 = vmul.f32 %v3355_v2, %v510_v55  ;;  %v513_v15 = vmul.f32 %v2492_v48, %v3268_v54 }
 0x1b2   : > { %736 = vst [vmem:[#allocation2 + $0x50] sm:$0xff] %v2353_v0  ;;  %v514_v39 = vmul.f32 %v2492_v48, %v3296_v11  ;;  %v565_v47 = vmul.f32 %v3357_v5, %v511_v57  ;;  %v616_v51 = vadd.f32 %v3359_v25, %v562_v58  ;;  %v617_v10 = vadd.f32 %v3361_v38, %v563_v53 }
 0x1b3   : > { %v515_v22 = vmul.f32 %v2492_v48, %v3299_v37  ;;  %v2496_v20 = vpop.eup %2495  ;;  %737 = vst [vmem:[#allocation2 + $0x68] sm:$0xff] %v2354_v59  ;;  %v618_v13 = vadd.f32 %v3363_v28, %v564_v24  ;;  %v566_v7 = vmul.f32 %v3351_v29, %v512_v23  ;;  %v567_v44 = vmul.f32 %v3353_v32, %v513_v15 }
 0x1b4   : > { %v568_v54 = vmul.f32 %v3355_v2, %v514_v39  ;;  %v619_v11 = vadd.f32 %v3365_v43, %v565_v47  ;;  %v2355_v30 = vpack.c.bf16 %v617_v10, %v616_v51  ;;  %v516_v34 = vmul.f32 %v2494_v21, %v3255_v50 }
 0x1b5   : > { %v569_v41 = vmul.f32 %v3357_v5, %v515_v22  ;;  %v620_v12 = vadd.f32 %v3359_v25, %v566_v7  ;;  %v621_v37 = vadd.f32 %v3361_v38, %v567_v44  ;;  %v517_v60 = vmul.f32 %v2494_v21, %v3258_v52 }
 0x1b6   : > { %v622_v45 = vadd.f32 %v3363_v28, %v568_v54  ;;  %v2356_v61 = vpack.c.bf16 %v619_v11, %v618_v13  ;;  %738 = vst [vmem:[#allocation2 + $0x8] sm:$0xff] %v2355_v30  ;;  %v518_v40 = vmul.f32 %v2494_v21, %v3308_v35  ;;  %v519_v42 = vmul.f32 %v2494_v21, %v3311_v33 }
 0x1b7   : > { %v623_v36 = vadd.f32 %v3365_v43, %v569_v41  ;;  %v2357_v48 = vpack.c.bf16 %v621_v37, %v620_v12  ;;  %v570_v16 = vmul.f32 %v3351_v29, %v516_v34  ;;  %v571_v50 = vmul.f32 %v3353_v32, %v517_v60 }
 0x1b8   : > { %v520_v27 = vmul.f32 %v2496_v20, %v3290_v1  ;;  %739 = vst [vmem:[#allocation2 + $0x48] sm:$0xff] %v2356_v61  ;;  %v572_v63 = vmul.f32 %v3355_v2, %v518_v40  ;;  %v573_v52 = vmul.f32 %v3357_v5, %v519_v42  ;;  %v521_v9 = vmul.f32 %v2496_v20, %v3293_v19  ;;  %v2498_v59 = vpop.eup %2497 }
 0x1b9   : > { %v2358_v62 = vpack.c.bf16 %v623_v36, %v622_v45  ;;  %740 = vst [vmem:[#allocation2 + $0x40] sm:$0xff] %v2357_v48  ;;  %v624_v35 = vadd.f32 %v3359_v25, %v570_v16  ;;  %v625_v33 = vadd.f32 %v3361_v38, %v571_v50  ;;  %v522_v49 = vmul.f32 %v2496_v20, %v3324_v31 }
 0x1ba   : > { %v523_v18 = vmul.f32 %v2496_v20, %v3327_v17  ;;  %v626_v1 = vadd.f32 %v3363_v28, %v572_v63  ;;  %v627_v26 = vadd.f32 %v3365_v43, %v573_v52  ;;  %v574_v8 = vmul.f32 %v3351_v29, %v520_v27 }
 0x1bb   : > { %741 = vst [vmem:[#allocation2 + $0x20] sm:$0xff] %v2358_v62  ;;  %v575_v14 = vmul.f32 %v3353_v32, %v521_v9  ;;  %v2359_v0 = vpack.c.bf16 %v625_v33, %v624_v35  ;;  %v576_v19 = vmul.f32 %v3355_v2, %v522_v49  ;;  %v524_v24 = vmul.f32 %v2498_v59, %v3282_v6 }
 0x1bc   : > { %v577_v55 = vmul.f32 %v3357_v5, %v523_v18  ;;  %v2360_v57 = vpack.c.bf16 %v627_v26, %v626_v1  ;;  %v628_v31 = vadd.f32 %v3359_v25, %v574_v8  ;;  %v525_v3 = vmul.f32 %v2498_v59, %v3285_v4 }
 0x1bd   : > { %v629_v17 = vadd.f32 %v3361_v38, %v575_v14  ;;  %742 = vst [vmem:[#allocation2 + $0x10] sm:$0xff] %v2359_v0  ;;  %v630_v58 = vadd.f32 %v3363_v28, %v576_v19  ;;  %v526_v15 = vmul.f32 %v2498_v59, %v3336_v56  ;;  %v527_v39 = vmul.f32 %v2498_v59, %v3339_v46 }
 0x1be   : > { %v631_v53 = vadd.f32 %v3365_v43, %v577_v55  ;;  %743 = vst [vmem:[#allocation2 + $0x38] sm:$0xff] %v2360_v57  ;;  %v578_v47 = vmul.f32 %v3351_v29, %v524_v24  ;;  %v579_v51 = vmul.f32 %v3353_v32, %v525_v3 }
 0x1bf   : > { %v2361_v23 = vpack.c.bf16 %v629_v17, %v628_v31  ;;  %v580_v10 = vmul.f32 %v3355_v2, %v526_v15  ;;  %v581_v22 = vmul.f32 %v3357_v5, %v527_v39 }
 0x1c0   : > { %v2362_v21 = vpack.c.bf16 %v631_v53, %v630_v58  ;;  %v632_v20 = vadd.f32 %v3359_v25, %v578_v47  ;;  %v633_v13 = vadd.f32 %v3361_v38, %v579_v51 }
 0x1c1   : > { %744 = vst [vmem:[#allocation2 + $0x60] sm:$0xff] %v2361_v23  ;;  %v634_v6 = vadd.f32 %v3363_v28, %v580_v10  ;;  %v635_v4 = vadd.f32 %v3365_v43, %v581_v22 }
 0x1c2   : > { %745 = vst [vmem:[#allocation2 + $0x70] sm:$0xff] %v2362_v21  ;;  %v2363_v7 = vpack.c.bf16 %v633_v13, %v632_v20 }
 0x1c3   : > { %v2364_v56 = vpack.c.bf16 %v635_v4, %v634_v6 }
 0x1c4   : > { %746 = vst [vmem:[#allocation2 + $0x78] sm:$0xff] %v2363_v7 }
 0x1c5   : > { %747 = vst [vmem:[#allocation2 + $0x28] sm:$0xff] %v2364_v56 }
 0x1c6 PF: > { %v2499_v46 = vld [vmem:[%s3085_s28 + $0xe4] ss:$16 sps:$4 sm:$0xff]   ;;  %v2503_v32 = vld [vmem:[%s3085_s28 + $0xe0] ss:$16 sps:$4 sm:$0xff]   ;;  %s2381_s23 = sshll.u32 %s2898_s18, 8  ;;  %s2033_s25 = sshll.u32 %s3092_s11, 4  ;;  %s3680_s25 = int_to_ptr.vmem [resolvable:$true] %s2033_s25 }
 0x1c7   : > { %v2501_v29 = vld [vmem:[%s3085_s28 + $0x2e4] ss:$16 sps:$4 sm:$0xff]   ;;  %1612 = vmatprep.subr.bf16.mxu0 %v2499_v46  ;;  %v2504_v2 = vld [vmem:[%s3085_s28 + $0x2e0] ss:$16 sps:$4 sm:$0xff]   ;;  %s3678_s21 = scalar_lea.hbm %s3732_s4, %s2381_s23  ;;  %s2017_s18 = scalar_lea.sflag [#allocation5], %s3081_s0 }
 0x1c8   : > { %1685 = vmatprep.subr.bf16.mxu1 %v2501_v29  ;;  %v2505_v5 = vld [vmem:[%s3085_s28 + $0xc4] ss:$16 sps:$4 sm:$0xff]   ;;  %1613 = vmatpush1.bf16.msra.mxu0 %v2503_v32  ;;  %v2509_v38 = vld [vmem:[%s3085_s28 + $0xc0] ss:$16 sps:$4 sm:$0xff]   ;;  %v2603_v32 = vld [vmem:[%s3085_s28 + $0xec] ss:$16 sps:$4 sm:$0xff]  }
 0x1c9   : > { %1686 = vmatpush1.bf16.msra.mxu1 %v2504_v2  ;;  %v2507_v25 = vld [vmem:[%s3085_s28 + $0x2c4] ss:$16 sps:$4 sm:$0xff]   ;;  %1614 = vmatprep.subr.bf16.mxu0 %v2505_v5  ;;  %v2510_v28 = vld [vmem:[%s3085_s28 + $0x2c0] ss:$16 sps:$4 sm:$0xff]   ;;  %v2606_v2 = vld [vmem:[%s3085_s28 + $0x2ec] ss:$16 sps:$4 sm:$0xff]  }
 0x1ca   : > { %1687 = vmatprep.subr.bf16.mxu1 %v2507_v25  ;;  %v2511_v43 = vld [vmem:[%s3085_s28 + $0xa4] ss:$16 sps:$4 sm:$0xff]   ;;  %v2515_v54 = vld [vmem:[%s3085_s28 + $0xa0] ss:$16 sps:$4 sm:$0xff]   ;;  %s2818_s22 = scalar_lea.vmem %s3680_s25, 2048  ;;  %p3755_p0 = scmp.ne.s32.totalorder %s3744_s26, 0 }
 0x1cb   : > { %v2513_v44 = vld [vmem:[%s3085_s28 + $0x2a4] ss:$16 sps:$4 sm:$0xff]   ;;  %v2516_v11 = vld [vmem:[%s3085_s28 + $0x2a0] ss:$16 sps:$4 sm:$0xff]   ;;  %p2819_p5 = scmp.ne.s32.totalorder %s3680_s25, %s2818_s22  ;;  %s2917_s24 = smov [#allocation11]  }
 0x1cc   : > { %1615 = vmatpush1.bf16.msra.mxu0 %v2509_v38  ;;  %v2517_v30 = vld [vmem:[%s3085_s28 + $0x84] ss:$16 sps:$4 sm:$0xff]   ;;  %v2521_v34 = vld [vmem:[%s3085_s28 + $0x80] ss:$16 sps:$4 sm:$0xff]   ;;  %v2601_v38 = vld [vmem:[%s3085_s28 + $0xe8] ss:$16 sps:$4 sm:$0xff]  }
 0x1cd   : > { %1688 = vmatpush1.bf16.msra.mxu1 %v2510_v28  ;;  %1616 = vmatprep.subr.bf16.mxu0 %v2511_v43  ;;  %v2519_v41 = vld [vmem:[%s3085_s28 + $0x284] ss:$16 sps:$4 sm:$0xff]   ;;  %v2522_v12 = vld [vmem:[%s3085_s28 + $0x280] ss:$16 sps:$4 sm:$0xff]   ;;  %v2604_v28 = vld [vmem:[%s3085_s28 + $0x2e8] ss:$16 sps:$4 sm:$0xff]   ;;  %p2820_p1 = pnand %p2819_p5, %p3755_p0 }
 0x1ce   : > { %1689 = vmatprep.subr.bf16.mxu1 %v2513_v44  ;;  %v2523_v37 = vld [vmem:[%s3085_s28 + $0x64] ss:$16 sps:$4 sm:$0xff]   ;;  %v2527_v60 = vld [vmem:[%s3085_s28 + $0x60] ss:$16 sps:$4 sm:$0xff]   ;;  %v2609_v43 = vld [vmem:[%s3085_s28 + $0xcc] ss:$16 sps:$4 sm:$0xff]  }
 0x1cf   : > { %v2525_v45 = vld [vmem:[%s3085_s28 + $0x264] ss:$16 sps:$4 sm:$0xff]   ;;  %v2528_v61 = vld [vmem:[%s3085_s28 + $0x260] ss:$16 sps:$4 sm:$0xff]   ;;  %v2612_v44 = vld [vmem:[%s3085_s28 + $0x2cc] ss:$16 sps:$4 sm:$0xff]   ;;  %p2821_p7 = pneg %p2820_p1 }
 0x1d0   : > { %1617 = vmatpush1.bf16.msra.mxu0 %v2515_v54  ;;  %v2529_v36 = vld [vmem:[%s3085_s28 + $0x44] ss:$16 sps:$4 sm:$0xff]   ;;  %v2533_v42 = vld [vmem:[%s3085_s28 + $0x40] ss:$16 sps:$4 sm:$0xff]   ;;  %v2607_v54 = vld [vmem:[%s3085_s28 + $0xc8] ss:$16 sps:$4 sm:$0xff]  }
 0x1d1   : > { %1690 = vmatpush1.bf16.msra.mxu1 %v2516_v11  ;;  %1618 = vmatprep.subr.bf16.mxu0 %v2517_v30  ;;  %v2531_v40 = vld [vmem:[%s3085_s28 + $0x244] ss:$16 sps:$4 sm:$0xff]   ;;  %v2534_v48 = vld [vmem:[%s3085_s28 + $0x240] ss:$16 sps:$4 sm:$0xff]   ;;  %v2610_v11 = vld [vmem:[%s3085_s28 + $0x2c8] ss:$16 sps:$4 sm:$0xff]  }
 0x1d2   : > { %1691 = vmatprep.subr.bf16.mxu1 %v2519_v41  ;;  %v2535_v16 = vld [vmem:[%s3085_s28 + $0x24] ss:$16 sps:$4 sm:$0xff]   ;;  %v2539_v27 = vld [vmem:[%s3085_s28 + $0x20] ss:$16 sps:$4 sm:$0xff]   ;;  %v2615_v30 = vld [vmem:[%s3085_s28 + $0xac] ss:$16 sps:$4 sm:$0xff]  }
 0x1d3   : > { %v2537_v50 = vld [vmem:[%s3085_s28 + $0x224] ss:$16 sps:$4 sm:$0xff]   ;;  %v2540_v62 = vld [vmem:[%s3085_s28 + $0x220] ss:$16 sps:$4 sm:$0xff]   ;;  %v2618_v41 = vld [vmem:[%s3085_s28 + $0x2ac] ss:$16 sps:$4 sm:$0xff]  }
 0x1d4   : > { %1619 = vmatpush1.bf16.msra.mxu0 %v2521_v34  ;;  %v2541_v63 = vld [vmem:[%s3085_s28 + $0x4] ss:$16 sps:$4 sm:$0xff]   ;;  %v2545_v9 = vld [vmem:[%s3085_s28] ss:$16 sps:$4 sm:$0xff]   ;;  %s2822_s30 = sshll.u32 %s2917_s24, 4  ;;  %s2823_s30 = int_to_ptr.vmem [resolvable:$false] %s2822_s30 }
 0x1d5   : > { %1692 = vmatpush1.bf16.msra.mxu1 %v2522_v12  ;;  %1620 = vmatprep.subr.bf16.mxu0 %v2523_v37  ;;  %v2543_v52 = vld [vmem:[%s3085_s28 + $0x204] ss:$16 sps:$4 sm:$0xff]   ;;  %v2546_v35 = vld [vmem:[%s3085_s28 + $0x200] ss:$16 sps:$4 sm:$0xff]   ;;  %s2824_s7 = scalar_lea.vmem %s2823_s30, 4096  ;;  %p2825_p9 = scmp.lt.s32.totalorder %s3680_s25, %s2823_s30 }
 0x1d6   : > { %1693 = vmatprep.subr.bf16.mxu1 %v2525_v45  ;;  %v2547_v33 = vld [vmem:[%s3085_s28 + $0x1e4] ss:$16 sps:$4 sm:$0xff]   ;;  %v2551_v18 = vld [vmem:[%s3085_s28 + $0x1e0] ss:$16 sps:$4 sm:$0xff]   ;;  %p2826_p10 = scmp.lt.s32.totalorder %s2824_s7, %s2818_s22 }
 0x1d7   : > { %v2549_v49 = vld [vmem:[%s3085_s28 + $0x3e4] ss:$16 sps:$4 sm:$0xff]   ;;  %v2552_v1 = vld [vmem:[%s3085_s28 + $0x3e0] ss:$16 sps:$4 sm:$0xff]  }
 0x1d8   : > { %1621 = vmatpush1.bf16.msra.mxu0 %v2527_v60  ;;  %v2553_v26 = vld [vmem:[%s3085_s28 + $0x1c4] ss:$16 sps:$4 sm:$0xff]   ;;  %v2557_v14 = vld [vmem:[%s3085_s28 + $0x1c0] ss:$16 sps:$4 sm:$0xff]   ;;  %p2827_p6 = por %p2826_p10, %p2825_p9 }
 0x1d9   : > { %1694 = vmatpush1.bf16.msra.mxu1 %v2528_v61  ;;  %1622 = vmatprep.subr.bf16.mxu0 %v2529_v36  ;;  %v2555_v8 = vld [vmem:[%s3085_s28 + $0x3c4] ss:$16 sps:$4 sm:$0xff]   ;;  %v2558_v0 = vld [vmem:[%s3085_s28 + $0x3c0] ss:$16 sps:$4 sm:$0xff]   ;;  %v2613_v36 = vld [vmem:[%s3085_s28 + $0xa8] ss:$16 sps:$4 sm:$0xff]  }
 0x1da   : > { %1695 = vmatprep.subr.bf16.mxu1 %v2531_v40  ;;  %v2559_v19 = vld [vmem:[%s3085_s28 + $0x1a4] ss:$16 sps:$4 sm:$0xff]   ;;  %v2563_v57 = vld [vmem:[%s3085_s28 + $0x1a0] ss:$16 sps:$4 sm:$0xff]   ;;  %v2616_v40 = vld [vmem:[%s3085_s28 + $0x2a8] ss:$16 sps:$4 sm:$0xff]   ;;  %p2828_p8 = pnand %p2827_p6, %p2821_p7 }
 0x1db   : > { %v2561_v55 = vld [vmem:[%s3085_s28 + $0x3a4] ss:$16 sps:$4 sm:$0xff]   ;;  %v2564_v31 = vld [vmem:[%s3085_s28 + $0x3a0] ss:$16 sps:$4 sm:$0xff]  }
 0x1dc   : > { %1623 = vmatpush1.bf16.msra.mxu0 %v2533_v42  ;;  %v2565_v17 = vld [vmem:[%s3085_s28 + $0x184] ss:$16 sps:$4 sm:$0xff]   ;;  %v2569_v53 = vld [vmem:[%s3085_s28 + $0x180] ss:$16 sps:$4 sm:$0xff]   ;;  %v2621_v42 = vld [vmem:[%s3085_s28 + $0x8c] ss:$16 sps:$4 sm:$0xff]  }
 0x1dd   : > { %1696 = vmatpush1.bf16.msra.mxu1 %v2534_v48  ;;  %1624 = vmatprep.subr.bf16.mxu0 %v2535_v16  ;;  %v2567_v58 = vld [vmem:[%s3085_s28 + $0x384] ss:$16 sps:$4 sm:$0xff]   ;;  %v2570_v23 = vld [vmem:[%s3085_s28 + $0x380] ss:$16 sps:$4 sm:$0xff]   ;;  %v2624_v48 = vld [vmem:[%s3085_s28 + $0x28c] ss:$16 sps:$4 sm:$0xff]  }
 0x1de   : > { %1697 = vmatprep.subr.bf16.mxu1 %v2537_v50  ;;  %v2571_v21 = vld [vmem:[%s3085_s28 + $0x164] ss:$16 sps:$4 sm:$0xff]   ;;  %v2575_v15 = vld [vmem:[%s3085_s28 + $0x160] ss:$16 sps:$4 sm:$0xff]   ;;  %v2619_v16 = vld [vmem:[%s3085_s28 + $0x88] ss:$16 sps:$4 sm:$0xff]  }
 0x1df   : > { %v3515_v59 = vld [vmem:[#allocation2 + $0x34] ss:$40 sps:$4 sm:$0xff]   ;;  %v2576_v39 = vld [vmem:[%s3085_s28 + $0x360] ss:$16 sps:$4 sm:$0xff]   ;;  %v2622_v50 = vld [vmem:[%s3085_s28 + $0x288] ss:$16 sps:$4 sm:$0xff]  }
 0x1e0   : > { %1625 = vmatpush1.bf16.msra.mxu0 %v2539_v27  ;;  %v2573_v24 = vld [vmem:[%s3085_s28 + $0x364] ss:$16 sps:$4 sm:$0xff]   ;;  %1644 = vmatprep.mubr.bf16.mxu0 %v3515_v59  ;;  %v2581_v10 = vld [vmem:[%s3085_s28 + $0x140] ss:$16 sps:$4 sm:$0xff]   ;;  %v2627_v27 = vld [vmem:[%s3085_s28 + $0x6c] ss:$16 sps:$4 sm:$0xff]  }
 0x1e1   : > { %1698 = vmatpush1.bf16.msra.mxu1 %v2540_v62  ;;  %1626 = vmatprep.subr.bf16.mxu0 %v2541_v63  ;;  %v3518_v3 = vld [vmem:[#allocation2 + $0x4] ss:$24 sps:$4 sm:$0xff]   ;;  %v2582_v22 = vld [vmem:[%s3085_s28 + $0x340] ss:$16 sps:$4 sm:$0xff]   ;;  %v3552_v34 = vld [vmem:[#allocation2 + $0x54] ss:$-72 sps:$4 sm:$0xff]  }
 0x1e2   : > { %1699 = vmatprep.subr.bf16.mxu1 %v2543_v52  ;;  %1717 = vmatprep.mubr.bf16.mxu1 %v3518_v3  ;;  %v2577_v47 = vld [vmem:[%s3085_s28 + $0x144] ss:$16 sps:$4 sm:$0xff]   ;;  %v2587_v6 = vld [vmem:[%s3085_s28 + $0x120] ss:$16 sps:$4 sm:$0xff]   ;;  %v2630_v62 = vld [vmem:[%s3085_s28 + $0x26c] ss:$16 sps:$4 sm:$0xff]  }
 0x1e3   : > { %v2579_v51 = vld [vmem:[%s3085_s28 + $0x344] ss:$16 sps:$4 sm:$0xff]   ;;  %v2588_v4 = vld [vmem:[%s3085_s28 + $0x320] ss:$16 sps:$4 sm:$0xff]   ;;  %v3572_v63 = vld [vmem:[#allocation2 + $0x44] ss:$-48 sps:$4 sm:$0xff]  }
 0x1e4   : > { %1627 = vmatpush1.bf16.msra.mxu0 %v2545_v9  ;;  %v2583_v20 = vld [vmem:[%s3085_s28 + $0x124] ss:$16 sps:$4 sm:$0xff]   ;;  %v2593_v46 = vld [vmem:[%s3085_s28 + $0x100] ss:$16 sps:$4 sm:$0xff]   ;;  %v3576_v9 = vld [vmem:[#allocation2 + $0x40] ss:$-48 sps:$4 sm:$0xff]  }
 0x1e5   : > { %1700 = vmatpush1.bf16.msra.mxu1 %v2546_v35  ;;  %1628 = vmatprep.subr.bf16.mxu0 %v2547_v33  ;;  %v2585_v13 = vld [vmem:[%s3085_s28 + $0x324] ss:$16 sps:$4 sm:$0xff]   ;;  %v2594_v29 = vld [vmem:[%s3085_s28 + $0x300] ss:$16 sps:$4 sm:$0xff]   ;;  %v2625_v33 = vld [vmem:[%s3085_s28 + $0x68] ss:$16 sps:$4 sm:$0xff]  }
 0x1e6   : > { %1701 = vmatprep.subr.bf16.mxu1 %v2549_v49  ;;  %v2589_v7 = vld [vmem:[%s3085_s28 + $0x104] ss:$16 sps:$4 sm:$0xff]   ;;  %v3538_v5 = vld [vmem:[#allocation2 + $0x30] ss:$40 sps:$4 sm:$0xff]  }
 0x1e7   : > { %v2591_v56 = vld [vmem:[%s3085_s28 + $0x304] ss:$16 sps:$4 sm:$0xff]   ;;  %v3540_v25 = vld [vmem:[#allocation2] ss:$24 sps:$4 sm:$0xff]   ;;  %v3556_v60 = vld [vmem:[#allocation2 + $0x50] ss:$-72 sps:$4 sm:$0xff]  }
 0x1e8   : > { %1629 = vmatpush2.bf16.msra.mxu0 %v2551_v18  ;;  %v753_v12 = vld [vmem:[#allocation2 + $0x68] sm:$0xff]  ;;  %v3574_v52 = vld [vmem:[#allocation2 + $0x24] ss:$24 sps:$4 sm:$0xff]   ;;  %v3579_v35 = vld [vmem:[#allocation2 + $0x20] ss:$24 sps:$4 sm:$0xff]  }
 0x1e9   : > { %1702 = vmatpush2.bf16.msra.mxu1 %v2552_v1  ;;  %1630 = vmatprep.subr.bf16.mxu0 %v2553_v26  ;;  %v755_v37 = vld [vmem:[#allocation2 + $0x48] sm:$0xff]  ;;  %v2628_v49 = vld [vmem:[%s3085_s28 + $0x268] ss:$16 sps:$4 sm:$0xff]   ;;  %v2633_v18 = vld [vmem:[%s3085_s28 + $0x4c] ss:$16 sps:$4 sm:$0xff]  }
 0x1ea   : > { %1703 = vmatprep.subr.bf16.mxu1 %v2555_v8  ;;  %v3554_v45 = vcombine.high %v753_v12, %v755_v37  ;;  %v3558_v61 = vcombine.low %v753_v12, %v755_v37  ;;  %v2636_v1 = vld [vmem:[%s3085_s28 + $0x24c] ss:$16 sps:$4 sm:$0xff]   ;;  %v2631_v26 = vld [vmem:[%s3085_s28 + $0x48] ss:$16 sps:$4 sm:$0xff]  }
 0x1eb   : > { %v2634_v8 = vld [vmem:[%s3085_s28 + $0x248] ss:$16 sps:$4 sm:$0xff]  }
 0x1ec   : > { %1631 = vmatpush2.bf16.msra.mxu0 %v2557_v14  ;;  %v2639_v14 = vld [vmem:[%s3085_s28 + $0x2c] ss:$16 sps:$4 sm:$0xff]   ;;  %v2700_v12 = vld [vmem:[%s3085_s28 + $0x128] ss:$16 sps:$4 sm:$0xff]  }
 0x1ed   : > { %1704 = vmatpush2.bf16.msra.mxu1 %v2558_v0  ;;  %1632 = vmatprep.subr.bf16.mxu0 %v2559_v19  ;;  %v2642_v0 = vld [vmem:[%s3085_s28 + $0x22c] ss:$16 sps:$4 sm:$0xff]   ;;  %v2703_v37 = vld [vmem:[%s3085_s28 + $0x328] ss:$16 sps:$4 sm:$0xff]  }
 0x1ee   : > { %1705 = vmatprep.subr.bf16.mxu1 %v2561_v55  ;;  %v3592_v19 = vld [vmem:[#allocation2 + $0x64] ss:$24 sps:$4 sm:$0xff]   ;;  %v3594_v55 = vld [vmem:[#allocation2 + $0x74] ss:$-72 sps:$4 sm:$0xff]  }
 0x1f0   : > { %1633 = vmatpush2.bf16.msra.mxu0 %v2563_v57  ;;  %v3596_v57 = vld [vmem:[#allocation2 + $0x60] ss:$24 sps:$4 sm:$0xff]  }
 0x1f1   : > { %1706 = vmatpush2.bf16.msra.mxu1 %v2564_v31  ;;  %1634 = vmatprep.subr.bf16.mxu0 %v2565_v17  ;;  %v3599_v31 = vld [vmem:[#allocation2 + $0x70] ss:$-72 sps:$4 sm:$0xff]  }
 0x1f2   : > { %1707 = vmatprep.subr.bf16.mxu1 %v2567_v58  ;;  %v2637_v17 = vld [vmem:[%s3085_s28 + $0x28] ss:$16 sps:$4 sm:$0xff]  }
 0x1f3   : > { %v2640_v58 = vld [vmem:[%s3085_s28 + $0x228] ss:$16 sps:$4 sm:$0xff]  }
 0x1f4   : > { %1635 = vmatpush2.bf16.msra.mxu0 %v2569_v53  ;;  %v2645_v53 = vld [vmem:[%s3085_s28 + $0xc] ss:$16 sps:$4 sm:$0xff]  }
 0x1f5   : > { %1708 = vmatpush2.bf16.msra.mxu1 %v2570_v23  ;;  %1636 = vmatprep.subr.bf16.mxu0 %v2571_v21  ;;  %v2648_v23 = vld [vmem:[%s3085_s28 + $0x20c] ss:$16 sps:$4 sm:$0xff]   ;;  %v2643_v21 = vld [vmem:[%s3085_s28 + $0x8] ss:$16 sps:$4 sm:$0xff]  }
 0x1f6   : > { %1709 = vmatprep.subr.bf16.mxu1 %v2573_v24  ;;  %v2646_v24 = vld [vmem:[%s3085_s28 + $0x208] ss:$16 sps:$4 sm:$0xff]  }
 0x1f8   : > { %1637 = vmatpush2.bf16.msra.mxu0 %v2575_v15  ;;  %v2651_v15 = vld [vmem:[%s3085_s28 + $0x1ec] ss:$16 sps:$4 sm:$0xff]  }
 0x1f9   : > { %1710 = vmatpush2.bf16.msra.mxu1 %v2576_v39  ;;  %1638 = vmatprep.subr.bf16.mxu0 %v2577_v47  ;;  %v2654_v39 = vld [vmem:[%s3085_s28 + $0x3ec] ss:$16 sps:$4 sm:$0xff]   ;;  %v2649_v47 = vld [vmem:[%s3085_s28 + $0x1e8] ss:$16 sps:$4 sm:$0xff]  }
 0x1fa   : > { %1711 = vmatprep.subr.bf16.mxu1 %v2579_v51  ;;  %v2652_v51 = vld [vmem:[%s3085_s28 + $0x3e8] ss:$16 sps:$4 sm:$0xff]  }
 0x1fc   : > { %1639 = vmatpush2.bf16.msra.mxu0 %v2581_v10  ;;  %v2660_v10 = vld [vmem:[%s3085_s28 + $0x1cc] ss:$16 sps:$4 sm:$0xff]  }
 0x1fd   : > { %1712 = vmatpush2.bf16.msra.mxu1 %v2582_v22  ;;  %1640 = vmatprep.subr.bf16.mxu0 %v2583_v20  ;;  %v2663_v22 = vld [vmem:[%s3085_s28 + $0x3cc] ss:$16 sps:$4 sm:$0xff]   ;;  %v2658_v20 = vld [vmem:[%s3085_s28 + $0x1c8] ss:$16 sps:$4 sm:$0xff]  }
 0x1fe   : > { %1713 = vmatprep.subr.bf16.mxu1 %v2585_v13  ;;  %v2669_v13 = vld [vmem:[%s3085_s28 + $0x3ac] ss:$16 sps:$4 sm:$0xff]  }
 0x200   : > { %1641 = vmatpush2.bf16.msra.mxu0 %v2587_v6  ;;  %v2664_v6 = vld [vmem:[%s3085_s28 + $0x1a8] ss:$16 sps:$4 sm:$0xff]  }
 0x201   : > { %1714 = vmatpush2.bf16.msra.mxu1 %v2588_v4  ;;  %1642 = vmatprep.subr.bf16.mxu0 %v2589_v7  ;;  %v2667_v4 = vld [vmem:[%s3085_s28 + $0x3a8] ss:$16 sps:$4 sm:$0xff]   ;;  %v2678_v7 = vld [vmem:[%s3085_s28 + $0x18c] ss:$16 sps:$4 sm:$0xff]  }
 0x202   : > { %1715 = vmatprep.subr.bf16.mxu1 %v2591_v56  ;;  %v2681_v56 = vld [vmem:[%s3085_s28 + $0x38c] ss:$16 sps:$4 sm:$0xff]  }
 0x204   : > { %1643 = vmatpush2.bf16.msra.mxu0 %v2593_v46  ;;  %v2676_v46 = vld [vmem:[%s3085_s28 + $0x188] ss:$16 sps:$4 sm:$0xff]  }
 0x205   : > { %1716 = vmatpush2.bf16.msra.mxu1 %v2594_v29  ;;  %1758 = vmatprep.subr.bf16.mxu0 %v2603_v32  ;;  %v2679_v29 = vld [vmem:[%s3085_s28 + $0x388] ss:$16 sps:$4 sm:$0xff]   ;;  %v2684_v32 = vld [vmem:[%s3085_s28 + $0x16c] ss:$16 sps:$4 sm:$0xff]  }
 0x206   : > { %1831 = vmatprep.subr.bf16.mxu1 %v2606_v2  ;;  %v2687_v2 = vld [vmem:[%s3085_s28 + $0x36c] ss:$16 sps:$4 sm:$0xff]  }
 0x207   : > { %1645 = vmatmul.mubr.bf16.vlgmr.msra.gmra.mxu0 %v3538_v5 }
 0x208   : > { %1718 = vmatmul.mubr.bf16.vlgmr.msra.gmra.mxu1 %v3540_v25  ;;  %1759 = vmatpush1.bf16.msra.mxu0 %v2601_v38  ;;  %v2682_v38 = vld [vmem:[%s3085_s28 + $0x168] ss:$16 sps:$4 sm:$0xff]  }
 0x209   : > { %1832 = vmatpush1.bf16.msra.mxu1 %v2604_v28  ;;  %1760 = vmatprep.subr.bf16.mxu0 %v2609_v43  ;;  %v2685_v28 = vld [vmem:[%s3085_s28 + $0x368] ss:$16 sps:$4 sm:$0xff]   ;;  %v2696_v43 = vld [vmem:[%s3085_s28 + $0x14c] ss:$16 sps:$4 sm:$0xff]  }
 0x20a   : > { %1833 = vmatprep.subr.bf16.mxu1 %v2612_v44  ;;  %1654 = vmatprep.mubr.bf16.mxu0 %v3552_v34  ;;  %v2699_v44 = vld [vmem:[%s3085_s28 + $0x34c] ss:$16 sps:$4 sm:$0xff]  }
 0x20b   : > { %1727 = vmatprep.mubr.bf16.mxu1 %v3554_v45 }
 0x20c   : > { %1761 = vmatpush1.bf16.msra.mxu0 %v2607_v54  ;;  %v2694_v54 = vld [vmem:[%s3085_s28 + $0x148] ss:$16 sps:$4 sm:$0xff]  }
 0x20d   : > { %1834 = vmatpush1.bf16.msra.mxu1 %v2610_v11  ;;  %1762 = vmatprep.subr.bf16.mxu0 %v2615_v30  ;;  %v2697_v11 = vld [vmem:[%s3085_s28 + $0x348] ss:$16 sps:$4 sm:$0xff]   ;;  %v2702_v30 = vld [vmem:[%s3085_s28 + $0x12c] ss:$16 sps:$4 sm:$0xff]  }
 0x20e   : > { %1835 = vmatprep.subr.bf16.mxu1 %v2618_v41  ;;  %v2705_v41 = vld [vmem:[%s3085_s28 + $0x32c] ss:$16 sps:$4 sm:$0xff]  }
 0x20f   : > { %1655 = vmatmul.mubr.bf16.gmra.mxu0 %v3556_v60 }
 0x210   : > { %1728 = vmatmul.mubr.bf16.gmra.mxu1 %v3558_v61  ;;  %1763 = vmatpush1.bf16.msra.mxu0 %v2613_v36  ;;  %v2708_v36 = vld [vmem:[%s3085_s28 + $0x10c] ss:$16 sps:$4 sm:$0xff]  }
 0x211   : > { %1836 = vmatpush1.bf16.msra.mxu1 %v2616_v40  ;;  %1764 = vmatprep.subr.bf16.mxu0 %v2621_v42  ;;  %v2711_v40 = vld [vmem:[%s3085_s28 + $0x30c] ss:$16 sps:$4 sm:$0xff]   ;;  %v2706_v42 = vld [vmem:[%s3085_s28 + $0x108] ss:$16 sps:$4 sm:$0xff]  }
 0x212   : > { %1837 = vmatprep.subr.bf16.mxu1 %v2624_v48  ;;  %1664 = vmatprep.mubr.bf16.mxu0 %v3572_v63  ;;  %v2709_v48 = vld [vmem:[%s3085_s28 + $0x308] ss:$16 sps:$4 sm:$0xff]  }
 0x213   : > { %1737 = vmatprep.mubr.bf16.mxu1 %v3574_v52 }
 0x214   : > { %1765 = vmatpush1.bf16.msra.mxu0 %v2619_v16 }
 0x215   : > { %1838 = vmatpush1.bf16.msra.mxu1 %v2622_v50  ;;  %1766 = vmatprep.subr.bf16.mxu0 %v2627_v27 }
 0x216   : > { %1839 = vmatprep.subr.bf16.mxu1 %v2630_v62 }
 0x217   : > { %1665 = vmatmul.mubr.bf16.gmra.mxu0 %v3576_v9 }
 0x218   : > { %1738 = vmatmul.mubr.bf16.gmra.mxu1 %v3579_v35  ;;  %1767 = vmatpush1.bf16.msra.mxu0 %v2625_v33 }
 0x219   : > { %1840 = vmatpush1.bf16.msra.mxu1 %v2628_v49  ;;  %1768 = vmatprep.subr.bf16.mxu0 %v2633_v18 }
 0x21a   : > { %1841 = vmatprep.subr.bf16.mxu1 %v2636_v1  ;;  %1674 = vmatprep.mubr.bf16.mxu0 %v3592_v19 }
 0x21b   : > { %1747 = vmatprep.mubr.bf16.mxu1 %v3594_v55 }
 0x21c   : > { %1769 = vmatpush1.bf16.msra.mxu0 %v2631_v26 }
 0x21d   : > { %1842 = vmatpush1.bf16.msra.mxu1 %v2634_v8  ;;  %1770 = vmatprep.subr.bf16.mxu0 %v2639_v14 }
 0x21e   : > { %1843 = vmatprep.subr.bf16.mxu1 %v2642_v0 }
 0x21f   : > { %1675 = vmatmul.mubr.bf16.gmra.mxu0 %v3596_v57 }
 0x220   : > { %1748 = vmatmul.mubr.bf16.gmra.mxu1 %v3599_v31  ;;  %1771 = vmatpush1.bf16.msra.mxu0 %v2637_v17 }
 0x221   : > { %1844 = vmatpush1.bf16.msra.mxu1 %v2640_v58  ;;  %1772 = vmatprep.subr.bf16.mxu0 %v2645_v53 }
 0x222   : > { %1845 = vmatprep.subr.bf16.mxu1 %v2648_v23  ;;  %1790 = vmatprep.mubr.bf16.mxu0 %v3515_v59  ;;  %v2661_v59 = vld [vmem:[%s3085_s28 + $0x3c8] ss:$16 sps:$4 sm:$0xff]  }
 0x223   : > { %1863 = vmatprep.mubr.bf16.mxu1 %v3518_v3  ;;  %v2666_v3 = vld [vmem:[%s3085_s28 + $0x1ac] ss:$16 sps:$4 sm:$0xff]  }
 0x224   : > { %1773 = vmatpush1.bf16.msra.mxu0 %v2643_v21 }
 0x225   : > { %1846 = vmatpush1.bf16.msra.mxu1 %v2646_v24  ;;  %1774 = vmatprep.subr.bf16.mxu0 %v2651_v15 }
 0x226   : > { %1847 = vmatprep.subr.bf16.mxu1 %v2654_v39 }
 0x228   : > { %1775 = vmatpush2.bf16.msra.mxu0 %v2649_v47 }
 0x229   : > { %1848 = vmatpush2.bf16.msra.mxu1 %v2652_v51  ;;  %1776 = vmatprep.subr.bf16.mxu0 %v2660_v10 }
 0x22a   : > { %1849 = vmatprep.subr.bf16.mxu1 %v2663_v22 }
 0x22c   : > { %1777 = vmatpush2.bf16.msra.mxu0 %v2658_v20 }
 0x22d   : > { %1850 = vmatpush2.bf16.msra.mxu1 %v2661_v59  ;;  %1778 = vmatprep.subr.bf16.mxu0 %v2666_v3 }
 0x22e   : > { %1851 = vmatprep.subr.bf16.mxu1 %v2669_v13 }
 0x230   : > { %1779 = vmatpush2.bf16.msra.mxu0 %v2664_v6 }
 0x231   : > { %1852 = vmatpush2.bf16.msra.mxu1 %v2667_v4  ;;  %1780 = vmatprep.subr.bf16.mxu0 %v2678_v7 }
 0x232   : > { %1853 = vmatprep.subr.bf16.mxu1 %v2681_v56 }
 0x234   : > { %1781 = vmatpush2.bf16.msra.mxu0 %v2676_v46 }
 0x235   : > { %1854 = vmatpush2.bf16.msra.mxu1 %v2679_v29  ;;  %1782 = vmatprep.subr.bf16.mxu0 %v2684_v32 }
 0x236   : > { %1855 = vmatprep.subr.bf16.mxu1 %v2687_v2 }
 0x238   : > { %1783 = vmatpush2.bf16.msra.mxu0 %v2682_v38 }
 0x239   : > { %1856 = vmatpush2.bf16.msra.mxu1 %v2685_v28  ;;  %1784 = vmatprep.subr.bf16.mxu0 %v2696_v43 }
 0x23a   : > { %1857 = vmatprep.subr.bf16.mxu1 %v2699_v44 }
 0x23c   : > { %1785 = vmatpush2.bf16.msra.mxu0 %v2694_v54 }
 0x23d   : > { %1858 = vmatpush2.bf16.msra.mxu1 %v2697_v11  ;;  %1786 = vmatprep.subr.bf16.mxu0 %v2702_v30 }
 0x23e   : > { %1859 = vmatprep.subr.bf16.mxu1 %v2705_v41 }
 0x240   : > { %1787 = vmatpush2.bf16.msra.mxu0 %v2700_v12 }
 0x241   : > { %1860 = vmatpush2.bf16.msra.mxu1 %v2703_v37  ;;  %1788 = vmatprep.subr.bf16.mxu0 %v2708_v36 }
 0x242   : > { %1861 = vmatprep.subr.bf16.mxu1 %v2711_v40 }
 0x244   : > { %1789 = vmatpush2.bf16.msra.mxu0 %v2706_v42 }
 0x245   : > { %1862 = vmatpush2.bf16.msra.mxu1 %v2709_v48 }
 0x247   : > { %1791 = vmatmul.mubr.bf16.vlgmr.msra.gmra.mxu0 %v3538_v5 }
 0x248   : > { %1864 = vmatmul.mubr.bf16.vlgmr.msra.gmra.mxu1 %v3540_v25  ;;  %1800 = vmatprep.mubr.bf16.mxu0 %v3552_v34 }
 0x249   : > { %1873 = vmatprep.mubr.bf16.mxu1 %v3554_v45 }
 0x24f   : > { %1801 = vmatmul.mubr.bf16.gmra.mxu0 %v3556_v60 }
 0x250   : > { %1874 = vmatmul.mubr.bf16.gmra.mxu1 %v3558_v61  ;;  %1810 = vmatprep.mubr.bf16.mxu0 %v3572_v63 }
 0x251   : > { %1883 = vmatprep.mubr.bf16.mxu1 %v3574_v52 }
 0x257   : > { %1811 = vmatmul.mubr.bf16.gmra.mxu0 %v3576_v9 }
 0x258   : > { %1884 = vmatmul.mubr.bf16.gmra.mxu1 %v3579_v35  ;;  %1820 = vmatprep.mubr.bf16.mxu0 %v3592_v19 }
 0x259   : > { %1893 = vmatprep.mubr.bf16.mxu1 %v3594_v55 }
 0x25f   : > { %1821 = vmatmul.mubr.bf16.gmra.mxu0 %v3596_v57 }
 0x260   : > { %1894 = vmatmul.mubr.bf16.gmra.mxu1 %v3599_v31 }
 0x2c7   : > { %v1646_v5 = vpop.f32.mrf.mxu0 }
 0x2c8   : > { %v1719_v25 = vpop.f32.mrf.mxu1 }
 0x2c9   : > { %v1720_v34 = vadd.f32 %v1719_v25, %v1646_v5  ;;  %v1648_v45 = vpop.f32.mrf.mxu0 }
 0x2ca   : > { %v1721_v60 = vpop.f32.mrf.mxu1 }
 0x2cb   : > { %v1722_v61 = vadd.f32 %v1721_v60, %v1648_v45  ;;  %v1650_v16 = vpop.f32.mrf.mxu0 }
 0x2cc   : > { %v1723_v50 = vpop.f32.mrf.mxu1 }
 0x2cd   : > { %v2365_v27 = vpack.c.bf16 %v1722_v61, %v1720_v34  ;;  %v1652_v62 = vpop.f32.mrf.mxu0  ;;  %v1724_v52 = vadd.f32 %v1723_v50, %v1650_v16 }
 0x2ce   : > { %v1725_v63 = vpop.f32.mrf.mxu1 }
 0x2cf   : > { %2000 = vst [vmem:[%s3092_s11] sm:$0xff] %v2365_v27  ;;  %v1726_v9 = vadd.f32 %v1725_v63, %v1652_v62  ;;  %v1656_v35 = vpop.f32.mrf.mxu0 }
 0x2d0   : > { %v1729_v33 = vpop.f32.mrf.mxu1 }
 0x2d1   : > { %v2367_v49 = vpack.c.bf16 %v1726_v9, %v1724_v52  ;;  %v1730_v18 = vadd.f32 %v1729_v33, %v1656_v35  ;;  %v1658_v1 = vpop.f32.mrf.mxu0 }
 0x2d2   : > { %v1731_v26 = vpop.f32.mrf.mxu1 }
 0x2d3   : > { %2002 = vst [vmem:[%s3092_s11 + $0x10] sm:$0xff] %v2367_v49  ;;  %v1732_v8 = vadd.f32 %v1731_v26, %v1658_v1  ;;  %v1660_v14 = vpop.f32.mrf.mxu0 }
 0x2d4   : > { %v1733_v0 = vpop.f32.mrf.mxu1 }
 0x2d5   : > { %v2369_v19 = vpack.c.bf16 %v1732_v8, %v1730_v18  ;;  %v1734_v55 = vadd.f32 %v1733_v0, %v1660_v14  ;;  %v1662_v57 = vpop.f32.mrf.mxu0 }
 0x2d6   : > { %v1735_v31 = vpop.f32.mrf.mxu1 }
 0x2d7   : > { %2004 = vst [vmem:[%s3092_s11 + $0x20] sm:$0xff] %v2369_v19  ;;  %v1736_v17 = vadd.f32 %v1735_v31, %v1662_v57  ;;  %v1666_v58 = vpop.f32.mrf.mxu0 }
 0x2d8   : > { %v1739_v53 = vpop.f32.mrf.mxu1 }
 0x2d9   : > { %v2371_v23 = vpack.c.bf16 %v1736_v17, %v1734_v55  ;;  %v1740_v21 = vadd.f32 %v1739_v53, %v1666_v58  ;;  %v1668_v24 = vpop.f32.mrf.mxu0 }
 0x2da   : > { %v1741_v15 = vpop.f32.mrf.mxu1 }
 0x2db   : > { %2006 = vst [vmem:[%s3092_s11 + $0x30] sm:$0xff] %v2371_v23  ;;  %v1742_v39 = vadd.f32 %v1741_v15, %v1668_v24  ;;  %v1670_v47 = vpop.f32.mrf.mxu0 }
 0x2dc   : > { %v1743_v51 = vpop.f32.mrf.mxu1 }
 0x2dd   : > { %v2373_v10 = vpack.c.bf16 %v1742_v39, %v1740_v21  ;;  %v1744_v22 = vadd.f32 %v1743_v51, %v1670_v47  ;;  %v1672_v20 = vpop.f32.mrf.mxu0 }
 0x2de   : > { %v1745_v59 = vpop.f32.mrf.mxu1 }
 0x2df   : > { %2008 = vst [vmem:[%s3092_s11 + $0x40] sm:$0xff] %v2373_v10  ;;  %v1746_v3 = vadd.f32 %v1745_v59, %v1672_v20  ;;  %v1676_v13 = vpop.f32.mrf.mxu0 }
 0x2e0   : > { %v1749_v6 = vpop.f32.mrf.mxu1 }
 0x2e1   : > { %v2375_v4 = vpack.c.bf16 %v1746_v3, %v1744_v22  ;;  %v1750_v7 = vadd.f32 %v1749_v6, %v1676_v13  ;;  %v1678_v56 = vpop.f32.mrf.mxu0 }
 0x2e2   : > { %v1751_v46 = vpop.f32.mrf.mxu1 }
 0x2e3   : > { %2010 = vst [vmem:[%s3092_s11 + $0x50] sm:$0xff] %v2375_v4  ;;  %v1752_v29 = vadd.f32 %v1751_v46, %v1678_v56  ;;  %v1680_v32 = vpop.f32.mrf.mxu0 }
 0x2e4   : > { %v1753_v2 = vpop.f32.mrf.mxu1 }
 0x2e5   : > { %v2377_v38 = vpack.c.bf16 %v1752_v29, %v1750_v7  ;;  %v1754_v28 = vadd.f32 %v1753_v2, %v1680_v32  ;;  %v1682_v43 = vpop.f32.mrf.mxu0 }
 0x2e6   : > { %v1755_v44 = vpop.f32.mrf.mxu1 }
 0x2e7   : > { %2012 = vst [vmem:[%s3092_s11 + $0x60] sm:$0xff] %v2377_v38  ;;  %v1756_v54 = vadd.f32 %v1755_v44, %v1682_v43 }
 0x2e9   : > { %v2379_v11 = vpack.c.bf16 %v1756_v54, %v1754_v28 }
 0x2eb   : > { %2014 = vst [vmem:[%s3092_s11 + $0x70] sm:$0xff] %v2379_v11 }
 0x307   : > { %v1792_v30 = vpop.f32.mrf.mxu0 }
 0x308   : > { %v1865_v41 = vpop.f32.mrf.mxu1 }
 0x309   : > { %v1794_v12 = vpop.f32.mrf.mxu0  ;;  %v1866_v36 = vadd.f32 %v1865_v41, %v1792_v30 }
 0x30a   : > { %v1867_v37 = vpop.f32.mrf.mxu1 }
 0x30b   : > { %v1868_v40 = vadd.f32 %v1867_v37, %v1794_v12  ;;  %v1796_v42 = vpop.f32.mrf.mxu0 }
 0x30c   : > { %v1869_v48 = vpop.f32.mrf.mxu1 }
 0x30d   : > { %v2366_v5 = vpack.c.bf16 %v1868_v40, %v1866_v36  ;;  %v1798_v25 = vpop.f32.mrf.mxu0  ;;  %v1870_v45 = vadd.f32 %v1869_v48, %v1796_v42 }
 0x30e   : > { %v1871_v34 = vpop.f32.mrf.mxu1 }
 0x30f   : > { %2001 = vst [vmem:[%s3092_s11 + $0x8] sm:$0xff] %v2366_v5  ;;  %v1872_v60 = vadd.f32 %v1871_v34, %v1798_v25  ;;  %v1802_v61 = vpop.f32.mrf.mxu0 }
 0x310   : > { %v1875_v16 = vpop.f32.mrf.mxu1 }
 0x311   : > { %v2368_v50 = vpack.c.bf16 %v1872_v60, %v1870_v45  ;;  %v1804_v27 = vpop.f32.mrf.mxu0  ;;  %v1876_v63 = vadd.f32 %v1875_v16, %v1802_v61 }
 0x312   : > { %v1877_v62 = vpop.f32.mrf.mxu1 }
 0x313   : > { %2003 = vst [vmem:[%s3092_s11 + $0x18] sm:$0xff] %v2368_v50  ;;  %v1878_v52 = vadd.f32 %v1877_v62, %v1804_v27  ;;  %v1806_v9 = vpop.f32.mrf.mxu0 }
 0x314   : > { %v1879_v35 = vpop.f32.mrf.mxu1 }
 0x315   : > { %v2370_v33 = vpack.c.bf16 %v1878_v52, %v1876_v63  ;;  %v1808_v49 = vpop.f32.mrf.mxu0  ;;  %v1880_v1 = vadd.f32 %v1879_v35, %v1806_v9 }
 0x316   : > { %v1881_v18 = vpop.f32.mrf.mxu1 }
 0x317   : > { %2005 = vst [vmem:[%s3092_s11 + $0x28] sm:$0xff] %v2370_v33  ;;  %v1882_v26 = vadd.f32 %v1881_v18, %v1808_v49  ;;  %v1812_v8 = vpop.f32.mrf.mxu0 }
 0x318   : > { %v1885_v14 = vpop.f32.mrf.mxu1 }
 0x319   : > { %v2372_v0 = vpack.c.bf16 %v1882_v26, %v1880_v1  ;;  %v1814_v19 = vpop.f32.mrf.mxu0  ;;  %v1886_v57 = vadd.f32 %v1885_v14, %v1812_v8 }
 0x31a   : > { %v1887_v55 = vpop.f32.mrf.mxu1 }
 0x31b   : > { %2007 = vst [vmem:[%s3092_s11 + $0x38] sm:$0xff] %v2372_v0  ;;  %v1888_v31 = vadd.f32 %v1887_v55, %v1814_v19  ;;  %v1816_v17 = vpop.f32.mrf.mxu0 }
 0x31c   : > { %v1889_v58 = vpop.f32.mrf.mxu1 }
 0x31d   : > { %v2374_v53 = vpack.c.bf16 %v1888_v31, %v1886_v57  ;;  %v1818_v23 = vpop.f32.mrf.mxu0  ;;  %v1890_v24 = vadd.f32 %v1889_v58, %v1816_v17 }
 0x31e   : > { %v1891_v21 = vpop.f32.mrf.mxu1 }
 0x31f   : > { %2009 = vst [vmem:[%s3092_s11 + $0x48] sm:$0xff] %v2374_v53  ;;  %v1892_v15 = vadd.f32 %v1891_v21, %v1818_v23  ;;  %v1822_v39 = vpop.f32.mrf.mxu0 }
 0x320   : > { %v1895_v47 = vpop.f32.mrf.mxu1 }
 0x321   : > { %v2376_v51 = vpack.c.bf16 %v1892_v15, %v1890_v24  ;;  %v1824_v10 = vpop.f32.mrf.mxu0  ;;  %v1896_v20 = vadd.f32 %v1895_v47, %v1822_v39 }
 0x322   : > { %v1897_v22 = vpop.f32.mrf.mxu1 }
 0x323   : > { %2011 = vst [vmem:[%s3092_s11 + $0x58] sm:$0xff] %v2376_v51  ;;  %v1898_v59 = vadd.f32 %v1897_v22, %v1824_v10  ;;  %v1826_v3 = vpop.f32.mrf.mxu0 }
 0x324   : > { %v1899_v13 = vpop.f32.mrf.mxu1 }
 0x325   : > { %v2378_v6 = vpack.c.bf16 %v1898_v59, %v1896_v20  ;;  %v1828_v4 = vpop.f32.mrf.mxu0  ;;  %v1900_v56 = vadd.f32 %v1899_v13, %v1826_v3 }
 0x326   : > { %v1901_v7 = vpop.f32.mrf.mxu1 }
 0x327   : > { %2013 = vst [vmem:[%s3092_s11 + $0x68] sm:$0xff] %v2378_v6  ;;  %v1902_v46 = vadd.f32 %v1901_v7, %v1828_v4 }
 0x329   : > { %v2380_v29 = vpack.c.bf16 %v1902_v46, %v1900_v56 }
 0x32b   : > { %2015 = vst [vmem:[%s3092_s11 + $0x78] sm:$0xff] %v2380_v29 }
 0x32c   : > { %2831 = shalt.err (!%p2828_p8)
}
 0x32d   : > { %s2832_s9 = scalar_lea.hbm %s3678_s21, 2048  ;;  %s2836_s5 = scalar_lea.hbm %s3732_s4, 6144 }
 0x32e   : > { %p2833_p3 = scmp.ne.s32.totalorder %s3678_s21, %s2832_s9  ;;  %p2837_p13 = scmp.lt.s32.totalorder %s3678_s21, %s3732_s4 }
 0x32f   : > { %p2838_p2 = scmp.lt.s32.totalorder %s2836_s5, %s2832_s9 }
 0x330   : > { %p2834_p12 = pnand %p2833_p3, %p3755_p0 }
 0x331   : > { %p2839_p4 = por %p2838_p2, %p2837_p13 }
 0x332   : > { %p2835_p11 = pneg %p2834_p12 }
 0x334   : > { %p2840_p5 = pnand %p2839_p4, %p2835_p11 }
 0x336   : > { %2843 = shalt.err (!%p2840_p5)
}
 0x337   : > { %s2918_s28 = smov 256   ;;  %s2919_s6 = smov 768  }
 0x338   : > { %s2920_s11 = smov 16  }
 0x339   : > { %2396 = dma.vmem_to_hbm [thread:$0]  (%p3755_p0), %s3680_s25, 2048, %s3678_s21, %s2017_s18, %s2918_s28, %s2919_s6, %s2920_s11  }
 0x33a PF: > { %p2423_p1 = scmp.ge.s32.totalorder %s2906_s20, 2  ;;  %s2048_s23 = sand.u32 1, %s2886_s15  }
 0x33b   : > { %p3756_p7 = scmp.ne.s32.totalorder %s3745_s27, 0  ;;  %s2049_s13 = scalar_lea.sflag [#allocation5], %s2048_s23 }
 0x33d   : > { %p2413_p9 = pnand %p2423_p1, %p3756_p7 }
 0x33f   : > { %p2414_p10 = pneg %p2413_p9 }
 0x341   : > { %2881 = dma.done.wait (%p2414_p10), %s2049_s13, 2048  }
 0x342   : > { %2883 = vsyncadd (%p2414_p10), %s2049_s13, 4294965248  ;;  %s22_s20 = sadd.s32 1, %s2906_s20   ;;  %s3757_s15 = smov %s2890_s16 }
 0x343   : > { %p19_p6 = scmp.ge.s32.totalorder %s22_s20, 5   ;;  %s3758_s16 = smov %s2894_s17 }
 0x344   : > { %s3759_s17 = smov %s3064_s29  ;;  %s3760_s18 = smov %s2902_s19 }
 0x345   : > { %s3761_s19 = smov %s3763_s8  ;;  %21 = sbr.rel (!%p19_p6) target bundleno = 12 (0xc), region = 99 }
 0x34a   :  { %2054 = vsyncpa [#allocation4], 1 }
 0x34b   :  { %2056 = vsyncpa [#allocation4 + $0x1], 1 }
 0x34c   :  { %2057 = vsyncpa [#allocation7], 1 }
 0x34d   :  { %2058 = vsyncpa [#allocation10], 1 }
 0x34e   :  { %2060 = vsyncpa [#allocation10 + $0x1], 1 }
 0x34f   :  { %2061 = vsyncpa [#allocation5], 1 }
 0x350   :  { %2063 = vsyncpa [#allocation5 + $0x1], 1 }

</bundles_post_ra>
